<compile_context>
chip_gen: v6e
topology: v6e:2x2x1
jax: 0.10.0
libtpu: 0.0.40
codegen_flags: <defaults>
</compile_context>

<pallas_src>
import math

import jax
import jax.numpy as jnp
from jax.experimental import pallas as pl
from jax.experimental.pallas import tpu as pltpu

P_DROP = 0.2
SCALE = 1.0 / math.sqrt(2.0)                 # .div(2 ** 0.5)
# keep  <=>  bits >= P_DROP * 2^32.  int() truncation shifts P(keep) by ~2e-10
# (intentional; do not "fix").  Plain Python int so the kernel body does not
# capture a traced u32[] constant.
DROP_THRESH = int(P_DROP * (1 << 32))        # 858993459


def _attn_core(q, k, v, keep, out_dtype, *, approx_recip=False):
    """softmax(q k^T / sqrt(2)) with optional dropout mask, then @ v."""
    # Fold the 1/sqrt(2) scale into q (same cost, frees the post-MXU tile).
    scores = jnp.einsum(
        "hqd,hkd->hqk", q * SCALE, k, preferred_element_type=jnp.float32
    )                                                    # (hb, S, S) f32
    m = jnp.max(scores, axis=-1, keepdims=True)
    e = jnp.exp(scores - m)
    denom = jnp.sum(e, axis=-1, keepdims=True)           # (hb, S, 1)
    if approx_recip:
        inv_denom = pl.reciprocal(denom, approx=True)    # EUP slot, free-ish
    else:
        inv_denom = 1.0 / denom                          # tiny (hb,S,1) divide
    if keep is None:                                     # eval mode
        p = e * inv_denom
    else:
        # dropout rescale folded into the per-row normalizer
        p = jnp.where(keep, e * (inv_denom * (1.0 / (1.0 - P_DROP))), 0.0)
    # bf16 operands for the P.V matmul (MXU-native), f32 accumulation.
    out = jnp.einsum(
        "hqk,hkd->hqd",
        p.astype(jnp.bfloat16),
        v.astype(jnp.bfloat16),
        preferred_element_type=jnp.float32,
    )
    return out.astype(out_dtype)


def _attn_nodrop_kernel(q_ref, k_ref, v_ref, o_ref):
    o_ref[...] = _attn_core(q_ref[...], k_ref[...], v_ref[...], None, o_ref.dtype)


def _attn_bits_kernel(q_ref, k_ref, v_ref, bits_ref, o_ref):
    # Externally supplied uint32 bits (reproducible / interpret-mode friendly).
    keep = bits_ref[...] >= DROP_THRESH
    o_ref[...] = _attn_core(q_ref[...], k_ref[...], v_ref[...], keep, o_ref.dtype)


def _attn_prng_kernel(seed_ref, q_ref, k_ref, v_ref, o_ref):
    # Production path: dropout bits from the TPU hardware PRNG (no HBM bits
    # stream, no separate threefry kernel).  Seed is salted with the grid
    # index so different head-blocks get independent masks.
    hb, S, _ = q_ref.shape
    pltpu.prng_seed(seed_ref[0] + pl.program_id(0))
    bits = pltpu.bitcast(pltpu.prng_random_bits((hb, S, S)), jnp.uint32)
    keep = bits >= DROP_THRESH
    o_ref[...] = _attn_core(
        q_ref[...], k_ref[...], v_ref[...], keep, o_ref.dtype, approx_recip=True
    )


def sdpa_dropout(q, k, v, dropout_key=None, *, seed=0, training=True,
                 use_hw_prng=False, head_blocks=1):
    """Fused SDPA + dropout.

    head_blocks: 1 for v5e/v6e (single TensorCore); 2 recommended on v7x so
      both TensorCores get half the heads (grid axis is "parallel").
    use_hw_prng=True: dropout bits drawn in-kernel (fastest; pass a fresh
      `seed` per call so successive calls don't reuse the same mask).
    use_hw_prng=False: bits drawn with jax.random.bits(dropout_key, ...) —
      reproducible against a pure-JAX reference (mask matches torch only in
      distribution, not bit-for-bit).
    """
    B, H, S, D = q.shape
    BH = B * H
    assert BH % head_blocks == 0
    hb = BH // head_blocks
    qf = q.reshape(BH, S, D)
    kf = k.reshape(BH, S, D)
    vf = v.reshape(BH, S, D)

    # Last two block dims equal the full (S, D)/(S, S) extents -> legal even
    # though 32 is not a multiple of 128.
    data_spec = pl.BlockSpec((hb, S, D), lambda i: (i, 0, 0))
    out_spec = pl.BlockSpec((hb, S, D), lambda i: (i, 0, 0))

    flops = 4 * BH * S * S * D               # two matmuls
    transcendentals = BH * S * S             # exp
    io_bytes = 4 * BH * S * D * q.dtype.itemsize   # q, k, v, out

    if not training:
        # Eval-mode bypass specialized at trace time (no runtime where()).
        kernel, inputs = _attn_nodrop_kernel, (qf, kf, vf)
        in_specs = [data_spec, data_spec, data_spec]
    elif use_hw_prng:
        seed_arr = jnp.full((1,), seed, dtype=jnp.int32)
        kernel, inputs = _attn_prng_kernel, (seed_arr, qf, kf, vf)
        in_specs = [pl.BlockSpec(memory_space=pltpu.MemorySpace.SMEM),
                    data_spec, data_spec, data_spec]
    else:
        assert dropout_key is not None
        bits = jax.random.bits(dropout_key, (BH, S, S), dtype=jnp.uint32)
        kernel, inputs = _attn_bits_kernel, (qf, kf, vf, bits)
        in_specs = [data_spec, data_spec, data_spec,
                    pl.BlockSpec((hb, S, S), lambda i: (i, 0, 0))]
        io_bytes += BH * S * S * 4

    out = pl.pallas_call(
        kernel,
        grid=(head_blocks,),
        out_shape=jax.ShapeDtypeStruct((BH, S, D), q.dtype),
        in_specs=in_specs,
        out_specs=out_spec,
        compiler_params=pltpu.CompilerParams(
            dimension_semantics=("parallel",)),
        cost_estimate=pl.CostEstimate(
            flops=flops, transcendentals=transcendentals,
            bytes_accessed=io_bytes),
    )(*inputs)
    # NOTE: everything is VMEM-resident (~200 KiB) today.  If S grows, the
    # H*S^2 score tile explodes (S=1024 -> 32 MiB/buffer) and blows v7x's
    # 64 MiB VMEM first; switch to a flash-style KV-tiled grid at that point.
    return out.reshape(B, H, S, D)


if __name__ == "__main__":
    key = jax.random.PRNGKey(0)
    kq, kk, kv, kd = jax.random.split(key, 4)
    B, H, S, D = 1, 8, 32, 32
    q1 = jax.random.normal(kq, (B, H, S, D), dtype=jnp.float32)
    k1 = jax.random.normal(kk, (B, H, S, D), dtype=jnp.float32)
    v1 = jax.random.normal(kv, (B, H, S, D), dtype=jnp.float32)

    # External-bits path: reproducible against the pure-JAX reference below.
    # (Production on real hardware: sdpa_dropout(q1, k1, v1, use_hw_prng=True,
    #  seed=..., head_blocks=2 on v7x).)
    out = sdpa_dropout(q1, k1, v1, dropout_key=kd)
    out = jax.block_until_ready(out)

    # pure-JAX reference using the identical dropout bits (same key -> same bits)
    bits = jax.random.bits(kd, (B * H, S, S), dtype=jnp.uint32).reshape(B, H, S, S)
    keep = bits >= DROP_THRESH
    qk = jnp.einsum("bhqd,bhkd->bhqk", q1, k1) * SCALE
    p = jax.nn.softmax(qk, axis=-1)
    p_drop = jnp.where(keep, p / (1.0 - P_DROP), 0.0)
    # bf16-matched reference (kernel runs the P.V matmul with bf16 operands)
    ref = jnp.einsum("bhqk,bhkd->bhqd",
                     p_drop.astype(jnp.bfloat16), v1.astype(jnp.bfloat16),
                     preferred_element_type=jnp.float32)
    # full-f32 reference as a coarse sanity check of the bf16 approximation
    ref_f32 = jnp.einsum("bhqk,bhkd->bhqd", p_drop, v1)

    # TODO(synk): not bit-identical to torch's dropout RNG stream (mask only
    # matches in distribution).
    assert out.shape == (B, H, S, D) and out.dtype == jnp.float32
    assert bool(jnp.all(jnp.isfinite(out)))
    assert bool(jnp.allclose(out, ref, rtol=5e-3, atol=5e-3)), float(
        jnp.max(jnp.abs(out - ref)))
    assert bool(jnp.allclose(out, ref_f32, rtol=3e-2, atol=3e-2)), float(
        jnp.max(jnp.abs(out - ref_f32)))
    print("KERNEL_OK")
</pallas_src>

<mosaic_0001>
module attributes {stable_mosaic.version = 11 : i64} {
  func.func @_attn_bits_kernel(%arg0: i32, %arg1: memref<8x32x32xf32, #tpu.memory_space<vmem>>, %arg2: memref<8x32x32xf32, #tpu.memory_space<vmem>>, %arg3: memref<8x32x32xf32, #tpu.memory_space<vmem>>, %arg4: memref<8x32x32xi32, #tpu.memory_space<vmem>>, %arg5: memref<8x32x32xf32, #tpu.memory_space<vmem>>) attributes {dimension_semantics = [#tpu.dimension_semantics<parallel>], iteration_bounds = array<i64: 1>, scalar_prefetch = 0 : i64, scratch_operands = 0 : i64, tpu.core_type = #tpu.core_type<tc>, window_params = [{transform_indices = @transform_0, window_bounds = array<i64: 8, 32, 32>}, {transform_indices = @transform_1, window_bounds = array<i64: 8, 32, 32>}, {transform_indices = @transform_2, window_bounds = array<i64: 8, 32, 32>}, {transform_indices = @transform_3, window_bounds = array<i64: 8, 32, 32>}, {transform_indices = @transform_4, window_bounds = array<i64: 8, 32, 32>}]} {
    %c0 = arith.constant 0 : index
    %c0_0 = arith.constant 0 : index
    %c0_1 = arith.constant 0 : index
    %0 = vector.load %arg4[%c0, %c0_0, %c0_1] : memref<8x32x32xi32, #tpu.memory_space<vmem>>, vector<8x32x32xi32>
    %c858993459_i32 = arith.constant 858993459 : i32
    %1 = vector.broadcast %c858993459_i32 : i32 to vector<8x32x32xi32>
    %2 = arith.cmpi uge, %0, %1 : vector<8x32x32xi32>
    %c0_2 = arith.constant 0 : index
    %c0_3 = arith.constant 0 : index
    %c0_4 = arith.constant 0 : index
    %3 = vector.load %arg1[%c0_2, %c0_3, %c0_4] : memref<8x32x32xf32, #tpu.memory_space<vmem>>, vector<8x32x32xf32>
    %c0_5 = arith.constant 0 : index
    %c0_6 = arith.constant 0 : index
    %c0_7 = arith.constant 0 : index
    %4 = vector.load %arg2[%c0_5, %c0_6, %c0_7] : memref<8x32x32xf32, #tpu.memory_space<vmem>>, vector<8x32x32xf32>
    %c0_8 = arith.constant 0 : index
    %c0_9 = arith.constant 0 : index
    %c0_10 = arith.constant 0 : index
    %5 = vector.load %arg3[%c0_8, %c0_9, %c0_10] : memref<8x32x32xf32, #tpu.memory_space<vmem>>, vector<8x32x32xf32>
    %cst = arith.constant 0.707106769 : f32
    %6 = vector.broadcast %cst : f32 to vector<8x32x32xf32>
    %7 = arith.mulf %3, %6 : vector<8x32x32xf32>
    "tpu.trace_start"() <{level = 10 : i32, message = "hqd,hkd->hqk"}> : () -> ()
    %cst_11 = arith.constant dense<0.000000e+00> : vector<8x32x32xf32>
    %8 = tpu.matmul %7, %4, %cst_11 {dimension_numbers = #tpu.dot_dimension_numbers<[2], [2], [1], [1], [0, 0, 0, 1, 1, 1], [0], [0]>} : vector<8x32x32xf32>, vector<8x32x32xf32>, vector<8x32x32xf32> -> vector<8x32x32xf32>
    "tpu.trace_stop"() : () -> ()
    %cst_12 = arith.constant dense<0xFF800000> : vector<8x32xf32>
    %9 = vector.multi_reduction <maximumf>, %8, %cst_12 [2] : vector<8x32x32xf32> to vector<8x32xf32>
    %10 = vector.shape_cast %9 : vector<8x32xf32> to vector<8x32x1xf32>
    %11 = vector.broadcast %10 : vector<8x32x1xf32> to vector<8x32x32xf32>
    %12 = arith.subf %8, %11 : vector<8x32x32xf32>
    %13 = math.exp %12 : vector<8x32x32xf32>
    %cst_13 = arith.constant dense<0.000000e+00> : vector<8x32xf32>
    %14 = vector.multi_reduction <add>, %13, %cst_13 [2] : vector<8x32x32xf32> to vector<8x32xf32>
    %15 = vector.shape_cast %14 : vector<8x32xf32> to vector<8x32x1xf32>
    %cst_14 = arith.constant 1.000000e+00 : f32
    %16 = vector.broadcast %cst_14 : f32 to vector<8x32x1xf32>
    %17 = arith.divf %16, %15 : vector<8x32x1xf32>
    %cst_15 = arith.constant 1.250000e+00 : f32
    %18 = vector.broadcast %cst_15 : f32 to vector<8x32x1xf32>
    %19 = arith.mulf %17, %18 : vector<8x32x1xf32>
    %20 = vector.broadcast %19 : vector<8x32x1xf32> to vector<8x32x32xf32>
    %21 = arith.mulf %13, %20 : vector<8x32x32xf32>
    %cst_16 = arith.constant 0.000000e+00 : f32
    %22 = vector.broadcast %cst_16 : f32 to vector<8x32x32xf32>
    %23 = arith.select %2, %21, %22 : vector<8x32x32xi1>, vector<8x32x32xf32>
    %24 = arith.truncf %23 : vector<8x32x32xf32> to vector<8x32x32xbf16>
    %25 = arith.truncf %5 : vector<8x32x32xf32> to vector<8x32x32xbf16>
    "tpu.trace_start"() <{level = 10 : i32, message = "hqk,hkd->hqd"}> : () -> ()
    %cst_17 = arith.constant dense<0.000000e+00> : vector<8x32x32xf32>
    %26 = tpu.matmul %24, %25, %cst_17 {dimension_numbers = #tpu.dot_dimension_numbers<[2], [1], [1], [2], [0, 0, 0, 1, 1, 2], [0], [0]>} : vector<8x32x32xbf16>, vector<8x32x32xbf16>, vector<8x32x32xf32> -> vector<8x32x32xf32>
    "tpu.trace_stop"() : () -> ()
    %c0_18 = arith.constant 0 : index
    %c0_19 = arith.constant 0 : index
    %c0_20 = arith.constant 0 : index
    %27 = vector.load %arg5[%c0_18, %c0_19, %c0_20] : memref<8x32x32xf32, #tpu.memory_space<vmem>>, vector<8x32x32xf32>
    tpu.vector_store %arg5[%c0_18, %c0_19, %c0_20], %26 {strides = array<i32>} : memref<8x32x32xf32, #tpu.memory_space<vmem>>, vector<8x32x32xf32>,
    return
  }
  func.func @transform_0(%arg0: i32) -> (i32, i32, i32) {
    %c0_i32 = arith.constant 0 : i32
    %c0_i32_0 = arith.constant 0 : i32
    %c0_i32_1 = arith.constant 0 : i32
    return %arg0, %c0_i32, %c0_i32_0 : i32, i32, i32
  }
  func.func @transform_1(%arg0: i32) -> (i32, i32, i32) {
    %c0_i32 = arith.constant 0 : i32
    %c0_i32_0 = arith.constant 0 : i32
    %c0_i32_1 = arith.constant 0 : i32
    return %arg0, %c0_i32, %c0_i32_0 : i32, i32, i32
  }
  func.func @transform_2(%arg0: i32) -> (i32, i32, i32) {
    %c0_i32 = arith.constant 0 : i32
    %c0_i32_0 = arith.constant 0 : i32
    %c0_i32_1 = arith.constant 0 : i32
    return %arg0, %c0_i32, %c0_i32_0 : i32, i32, i32
  }
  func.func @transform_3(%arg0: i32) -> (i32, i32, i32) {
    %c0_i32 = arith.constant 0 : i32
    %c0_i32_0 = arith.constant 0 : i32
    %c0_i32_1 = arith.constant 0 : i32
    return %arg0, %c0_i32, %c0_i32_0 : i32, i32, i32
  }
  func.func @transform_4(%arg0: i32) -> (i32, i32, i32) {
    %c0_i32 = arith.constant 0 : i32
    %c0_i32_0 = arith.constant 0 : i32
    %c0_i32_1 = arith.constant 0 : i32
    return %arg0, %c0_i32, %c0_i32_0 : i32, i32, i32
  }
}

</mosaic_0001>

<bundles_post_ra>
// kernel: tpu_custom_call.1
= control target key start
LH: loop header
LB: loop body
LE: loop exit
PB: predicated region body
PF: predicated region fallthrough
CT: control target
= control target key end

     0   :  { %9 = vsyncpa [#allocation3], 0  ;;  %s3269_s0 = inlined_call_operand.hbm [shape: f32[8,32,32], index: 0, kind: input, shape index: {}]   ;;  %s3270_s1 = inlined_call_operand.hbm [shape: f32[8,32,32], index: 1, kind: input, shape index: {}]   ;;  %s3271_s2 = inlined_call_operand.hbm [shape: f32[8,32,32], index: 2, kind: input, shape index: {}]   ;;  %s3272_s3 = inlined_call_operand.hbm [shape: u32[8,32,32], index: 3, kind: input, shape index: {}]   ;;  %s3273_s4 = inlined_call_operand.hbm [shape: f32[8,32,32], index: 4, kind: output, shape index: {}]  }
   0x1   :  { %10 = vsyncpa [#allocation6], 0 }
   0x2   :  { %11 = vsyncpa [#allocation9], 0 }
   0x3   :  { %12 = vsyncpa [#allocation4], 0  ;;  %s2705_s15 = smov [#allocation5]   ;;  %s2706_s17 = smov [#allocation2]  }
   0x4   :  { %s30_s16 = sshll.u32 %s2705_s15, 4  ;;  %s18_s18 = sshll.u32 %s2706_s17, 4  ;;  %s31_s16 = int_to_ptr.vmem [resolvable:$true] %s30_s16  ;;  %s19_s18 = int_to_ptr.vmem [resolvable:$true] %s18_s18 }
   0x5   :  { %s2605_s19 = scalar_lea.vmem %s31_s16, 4096  ;;  %p2610_p1 = scmp.lt.s32.totalorder %s31_s16, %s31_s16 }
   0x6   :  { %p2606_p0 = scmp.ne.s32.totalorder %s31_s16, %s2605_s19  ;;  %p2611_p2 = scmp.lt.s32.totalorder %s2605_s19, %s2605_s19 }
   0x8   :  { %p2612_p3 = por %p2611_p2, %p2610_p1 }
   0xa   :  { %p2613_p4 = pnand %p2612_p3, %p2606_p0 }
   0xc   :  { %2616 = shalt.err (!%p2613_p4)
}
   0xd   :  { %s2707_s20 = smov 128   ;;  %s2708_s21 = smov 8  }
   0xe   :  { %36 = dma.hbm_to_vmem [thread:$0]  %s3270_s1, 4096, %s31_s16, [#allocation6], %s2707_s20, %s2707_s20, %s2708_s21  }
   0xf   :  { %s2625_s24 = scalar_lea.vmem %s19_s18, 4096  ;;  %p2630_p6 = scmp.lt.s32.totalorder %s19_s18, %s19_s18 }
  0x10   :  { %p2626_p5 = scmp.ne.s32.totalorder %s19_s18, %s2625_s24  ;;  %p2631_p7 = scmp.lt.s32.totalorder %s2625_s24, %s2625_s24 }
  0x12   :  { %p2632_p8 = por %p2631_p7, %p2630_p6 }
  0x14   :  { %p2633_p9 = pnand %p2632_p8, %p2626_p5 }
  0x16   :  { %2636 = shalt.err (!%p2633_p9)
}
  0x17   :  { %24 = dma.hbm_to_vmem [thread:$0]  %s3269_s0, 4096, %s19_s18, [#allocation3], %s2707_s20, %s2707_s20, %s2708_s21  }
  0x18   :  { %s2709_s27 = smov [#allocation7]   ;;  %s2710_s29 = smov [#allocation8]  }
  0x19   :  { %s42_s28 = sshll.u32 %s2709_s27, 4  ;;  %s54_s30 = sshll.u32 %s2710_s29, 4  ;;  %s43_s28 = int_to_ptr.vmem [resolvable:$true] %s42_s28  ;;  %s55_s30 = int_to_ptr.vmem [resolvable:$true] %s54_s30 }
  0x1a   :  { %s2645_s1 = scalar_lea.vmem %s43_s28, 4096  ;;  %p2650_p11 = scmp.lt.s32.totalorder %s43_s28, %s43_s28 }
  0x1b   :  { %p2646_p10 = scmp.ne.s32.totalorder %s43_s28, %s2645_s1  ;;  %p2651_p12 = scmp.lt.s32.totalorder %s2645_s1, %s2645_s1 }
  0x1d   :  { %p2652_p13 = por %p2651_p12, %p2650_p11 }
  0x1f   :  { %p2653_p0 = pnand %p2652_p13, %p2646_p10 }
  0x21   :  { %2656 = shalt.err (!%p2653_p0)
}
  0x22   :  { %48 = dma.hbm_to_vmem [thread:$0]  %s3271_s2, 4096, %s43_s28, [#allocation6], %s2707_s20, %s2707_s20, %s2708_s21  }
  0x23   :  { %s2665_s0 = scalar_lea.vmem %s55_s30, 4096  ;;  %p2670_p2 = scmp.lt.s32.totalorder %s55_s30, %s55_s30 }
  0x24   :  { %p2666_p1 = scmp.ne.s32.totalorder %s55_s30, %s2665_s0  ;;  %p2671_p3 = scmp.lt.s32.totalorder %s2665_s0, %s2665_s0 }
  0x26   :  { %p2672_p4 = por %p2671_p3, %p2670_p2 }
  0x28   :  { %p2673_p5 = pnand %p2672_p4, %p2666_p1 }
  0x2a   :  { %2676 = shalt.err (!%p2673_p5)
}
  0x2b   :  { %60 = dma.hbm_to_vmem [thread:$0]  %s3272_s3, 4096, %s55_s30, [#allocation9], %s2707_s20, %s2707_s20, %s2708_s21  }
  0x2c   :  { %2697 = dma.done.wait [#allocation3], 4096  }
  0x2d   :  { %2698 = vsyncadd [#allocation3], 4294963200 }
  0x2e   :  { %2699 = dma.done.wait [#allocation6], 8192  }
  0x2f   :  { %2700 = vsyncadd [#allocation6], 4294959104 }
  0x30   :  { %2701 = dma.done.wait [#allocation9], 4096  }
  0x31   :  { %2702 = vsyncadd [#allocation9], 4294963200  ;;  %vm266_vm0 = vcmask 261120   ;;  %v173_v0 = vld [vmem:[#allocation5 + $0x18] sm:$0xff]  ;;  %v172_v2 = vld [vmem:[#allocation5 + $0x10] sm:$0xff]  ;;  %s2711_s2 = smov [#allocation10]  }
  0x32   :  { %v177_v1 = vld [vmem:[#allocation5 + $0x38] sm:$0xff]  ;;  %2286 = vmatprep.subr.msk.mxu0 %vm266_vm0, %v173_v0  ;;  %v176_v3 = vld [vmem:[#allocation5 + $0x30] sm:$0xff]  ;;  %v138_v4 = vld [vmem:[#allocation2] sm:$0xff]  ;;  %s2096_s3 = sshll.u32 %s2711_s2, 4  ;;  %s2097_s3 = int_to_ptr.vmem [resolvable:$true] %s2096_s3 }
  0x33   :  { %2300 = vmatprep.subr.msk.mxu1 %vm266_vm0, %v177_v1  ;;  %2287 = vmatpush3.xpose.msk.msra.mxu0 %vm266_vm0, %v173_v0  ;;  %v234_v5 = vmul.f32 0.70710677, %v138_v4  ;;  %v142_v6 = vld [vmem:[#allocation2 + $0x20] sm:$0xff]  ;;  %v171_v7 = vld [vmem:[#allocation5 + $0x8] sm:$0xff]  ;;  %v140_v14 = vld [vmem:[#allocation2 + $0x10] sm:$0xff]  ;;  %s2677_s9 = scalar_lea.vmem %s2097_s3, 4096  ;;  %p2682_p7 = scmp.lt.s32.totalorder %s2097_s3, %s2097_s3 }
  0x34   :  { %2301 = vmatpush3.xpose.msk.msra.mxu1 %vm266_vm0, %v177_v1  ;;  %2288 = vmatprep.subr.msk.mxu0 %vm266_vm0, %v172_v2  ;;  %v175_v8 = vld [vmem:[#allocation5 + $0x28] sm:$0xff]  ;;  %v238_v9 = vmul.f32 0.70710677, %v142_v6  ;;  %v170_v10 = vld [vmem:[#allocation5] sm:$0xff]  ;;  %v181_v15 = vld [vmem:[#allocation5 + $0x58] sm:$0xff]  ;;  %p2678_p6 = scmp.ne.s32.totalorder %s2097_s3, %s2677_s9  ;;  %p2683_p8 = scmp.lt.s32.totalorder %s2677_s9, %s2677_s9 }
  0x35   :  { %2302 = vmatprep.subr.msk.mxu1 %vm266_vm0, %v176_v3  ;;  %2294 = vmatprep.mubr.msk.f32.mxu0 %vm266_vm0, %v234_v5  ;;  %v174_v11 = vld [vmem:[#allocation5 + $0x20] sm:$0xff]  ;;  %v139_v12 = vld [vmem:[#allocation2 + $0x8] sm:$0xff]  ;;  %v185_v16 = vld [vmem:[#allocation5 + $0x78] sm:$0xff]  ;;  %v236_v20 = vmul.f32 0.70710677, %v140_v14 }
  0x36   :  { %2308 = vmatprep.mubr.msk.f32.mxu1 %vm266_vm0, %v238_v9  ;;  %v143_v13 = vld [vmem:[#allocation2 + $0x28] sm:$0xff]  ;;  %v235_v17 = vmul.f32 0.70710677, %v139_v12  ;;  %v144_v19 = vld [vmem:[#allocation2 + $0x30] sm:$0xff]  ;;  %v141_v21 = vld [vmem:[#allocation2 + $0x18] sm:$0xff]  ;;  %p2684_p9 = por %p2683_p8, %p2682_p7 }
  0x37   :  { %2289 = vmatpush3.xpose.msk.msra.mxu0 %vm266_vm0, %v172_v2  ;;  %v239_v18 = vmul.f32 0.70710677, %v143_v13  ;;  %v145_v22 = vld [vmem:[#allocation2 + $0x38] sm:$0xff]  ;;  %v146_v23 = vld [vmem:[#allocation2 + $0x40] sm:$0xff]  ;;  %v180_v24 = vld [vmem:[#allocation5 + $0x50] sm:$0xff] }
  0x38   :  { %2303 = vmatpush3.xpose.msk.msra.mxu1 %vm266_vm0, %v176_v3  ;;  %2290 = vmatprep.subr.msk.mxu0 %vm266_vm0, %v171_v7  ;;  %v240_v25 = vmul.f32 0.70710677, %v144_v19  ;;  %v237_v26 = vmul.f32 0.70710677, %v141_v21  ;;  %v184_v27 = vld [vmem:[#allocation5 + $0x70] sm:$0xff]  ;;  %v150_v29 = vld [vmem:[#allocation2 + $0x60] sm:$0xff]  ;;  %p2685_p10 = pnand %p2684_p9, %p2678_p6 }
  0x39   :  { %2304 = vmatprep.subr.msk.mxu1 %vm266_vm0, %v175_v8  ;;  %v241_v28 = vmul.f32 0.70710677, %v145_v22  ;;  %v242_v30 = vmul.f32 0.70710677, %v146_v23  ;;  %v179_v31 = vld [vmem:[#allocation5 + $0x48] sm:$0xff]  ;;  %v178_v34 = vld [vmem:[#allocation5 + $0x40] sm:$0xff] }
  0x3a   :  { %v246_v32 = vmul.f32 0.70710677, %v150_v29  ;;  %v183_v33 = vld [vmem:[#allocation5 + $0x68] sm:$0xff]  ;;  %v182_v35 = vld [vmem:[#allocation5 + $0x60] sm:$0xff]  ;;  %v189_v38 = vld [vmem:[#allocation5 + $0x98] sm:$0xff] }
  0x3b   :  { %2291 = vmatpush3.xpose.msk.msra.mxu0 %vm266_vm0, %v171_v7  ;;  %v147_v36 = vld [vmem:[#allocation2 + $0x48] sm:$0xff]  ;;  %v193_v40 = vld [vmem:[#allocation5 + $0xb8] sm:$0xff]  ;;  %v148_v41 = vld [vmem:[#allocation2 + $0x50] sm:$0xff] }
  0x3c   :  { %2305 = vmatpush3.xpose.msk.msra.mxu1 %vm266_vm0, %v175_v8  ;;  %2292 = vmatprep.subr.msk.mxu0 %vm266_vm0, %v170_v10  ;;  %v151_v37 = vld [vmem:[#allocation2 + $0x68] sm:$0xff]  ;;  %v243_v39 = vmul.f32 0.70710677, %v147_v36  ;;  %v149_v43 = vld [vmem:[#allocation2 + $0x58] sm:$0xff]  ;;  %v152_v44 = vld [vmem:[#allocation2 + $0x70] sm:$0xff] }
  0x3d   :  { %2306 = vmatprep.subr.msk.mxu1 %vm266_vm0, %v174_v11  ;;  %v247_v42 = vmul.f32 0.70710677, %v151_v37  ;;  %v153_v45 = vld [vmem:[#allocation2 + $0x78] sm:$0xff]  ;;  %v188_v46 = vld [vmem:[#allocation5 + $0x90] sm:$0xff]  ;;  %v244_v47 = vmul.f32 0.70710677, %v148_v41 }
  0x3e   :  { %v245_v48 = vmul.f32 0.70710677, %v149_v43  ;;  %v192_v49 = vld [vmem:[#allocation5 + $0xb0] sm:$0xff]  ;;  %v248_v50 = vmul.f32 0.70710677, %v152_v44  ;;  %v154_v51 = vld [vmem:[#allocation2 + $0x80] sm:$0xff] }
  0x3f   :  { %2293 = vmatpush3.xpose.msk.msra.mxu0 %vm266_vm0, %v170_v10  ;;  %v249_v52 = vmul.f32 0.70710677, %v153_v45  ;;  %v158_v53 = vld [vmem:[#allocation2 + $0xa0] sm:$0xff]  ;;  %v187_v54 = vld [vmem:[#allocation5 + $0x88] sm:$0xff]  ;;  %v250_v55 = vmul.f32 0.70710677, %v154_v51 }
  0x40   :  { %2307 = vmatpush3.xpose.msk.msra.mxu1 %vm266_vm0, %v174_v11  ;;  %2314 = vmatprep.subr.msk.mxu0 %vm266_vm0, %v181_v15  ;;  %v191_v56 = vld [vmem:[#allocation5 + $0xa8] sm:$0xff]  ;;  %v254_v57 = vmul.f32 0.70710677, %v158_v53  ;;  %v186_v58 = vld [vmem:[#allocation5 + $0x80] sm:$0xff]  ;;  %v197_v62 = vld [vmem:[#allocation5 + $0xd8] sm:$0xff] }
  0x41   :  { %2328 = vmatprep.subr.msk.mxu1 %vm266_vm0, %v185_v16  ;;  %v190_v59 = vld [vmem:[#allocation5 + $0xa0] sm:$0xff]  ;;  %v155_v60 = vld [vmem:[#allocation2 + $0x88] sm:$0xff]  ;;  %v201_v0 = vld [vmem:[#allocation5 + $0xf8] sm:$0xff] }
  0x42   :  { %2295 = vmatmul.mubr.msk.f32.vlgmr.msra.gmra.mxu0 %vm266_vm0, %v235_v17  ;;  %v159_v61 = vld [vmem:[#allocation2 + $0xa8] sm:$0xff]  ;;  %v251_v63 = vmul.f32 0.70710677, %v155_v60  ;;  %v156_v1 = vld [vmem:[#allocation2 + $0x90] sm:$0xff]  ;;  %v157_v3 = vld [vmem:[#allocation2 + $0x98] sm:$0xff] }
  0x43   :  { %2309 = vmatmul.mubr.msk.f32.vlgmr.msra.gmra.mxu1 %vm266_vm0, %v239_v18  ;;  %2315 = vmatpush3.xpose.msk.msra.mxu0 %vm266_vm0, %v181_v15  ;;  %v255_v2 = vmul.f32 0.70710677, %v159_v61  ;;  %v160_v4 = vld [vmem:[#allocation2 + $0xb0] sm:$0xff]  ;;  %v161_v5 = vld [vmem:[#allocation2 + $0xb8] sm:$0xff]  ;;  %v252_v7 = vmul.f32 0.70710677, %v156_v1 }
  0x44   :  { %2297 = vmatprep.mubr.msk.f32.mxu0 %vm266_vm0, %v236_v20  ;;  %2316 = vmatprep.subr.msk.mxu0 %vm266_vm0, %v180_v24  ;;  %v196_v6 = vld [vmem:[#allocation5 + $0xd0] sm:$0xff]  ;;  %v253_v8 = vmul.f32 0.70710677, %v157_v3  ;;  %v256_v10 = vmul.f32 0.70710677, %v160_v4  ;;  %v162_v11 = vld [vmem:[#allocation2 + $0xc0] sm:$0xff] }
  0x45   :  { %2329 = vmatpush3.xpose.msk.msra.mxu1 %vm266_vm0, %v185_v16  ;;  %2311 = vmatprep.mubr.msk.f32.mxu1 %vm266_vm0, %v240_v25  ;;  %v200_v9 = vld [vmem:[#allocation5 + $0xf0] sm:$0xff]  ;;  %v257_v12 = vmul.f32 0.70710677, %v161_v5  ;;  %v166_v13 = vld [vmem:[#allocation2 + $0xe0] sm:$0xff]  ;;  %v195_v14 = vld [vmem:[#allocation5 + $0xc8] sm:$0xff] }
  0x46   :  { %2330 = vmatprep.subr.msk.mxu1 %vm266_vm0, %v184_v27  ;;  %2298 = vmatmul.mubr.msk.f32.gmra.mxu0 %vm266_vm0, %v237_v26  ;;  %v258_v15 = vmul.f32 0.70710677, %v162_v11  ;;  %v199_v16 = vld [vmem:[#allocation5 + $0xe8] sm:$0xff]  ;;  %v262_v17 = vmul.f32 0.70710677, %v166_v13  ;;  %v194_v18 = vld [vmem:[#allocation5 + $0xc0] sm:$0xff] }
  0x47   :  { %2312 = vmatmul.mubr.msk.f32.gmra.mxu1 %vm266_vm0, %v241_v28  ;;  %2317 = vmatpush3.xpose.msk.msra.mxu0 %vm266_vm0, %v180_v24  ;;  %v198_v19 = vld [vmem:[#allocation5 + $0xe0] sm:$0xff]  ;;  %v163_v20 = vld [vmem:[#allocation2 + $0xc8] sm:$0xff]  ;;  %v164_v22 = vld [vmem:[#allocation2 + $0xd0] sm:$0xff] }
  0x48   :  { %2322 = vmatprep.mubr.msk.f32.mxu0 %vm266_vm0, %v242_v30  ;;  %2318 = vmatprep.subr.msk.mxu0 %vm266_vm0, %v179_v31  ;;  %v167_v21 = vld [vmem:[#allocation2 + $0xe8] sm:$0xff]  ;;  %v168_v23 = vld [vmem:[#allocation2 + $0xf0] sm:$0xff]  ;;  %v259_v24 = vmul.f32 0.70710677, %v163_v20  ;;  %v260_v26 = vmul.f32 0.70710677, %v164_v22 }
  0x49   :  { %2331 = vmatpush3.xpose.msk.msra.mxu1 %vm266_vm0, %v184_v27  ;;  %2336 = vmatprep.mubr.msk.f32.mxu1 %vm266_vm0, %v246_v32  ;;  %v263_v25 = vmul.f32 0.70710677, %v167_v21  ;;  %v165_v27 = vld [vmem:[#allocation2 + $0xd8] sm:$0xff]  ;;  %v264_v28 = vmul.f32 0.70710677, %v168_v23 }
  0x4a   :  { %2332 = vmatprep.subr.msk.mxu1 %vm266_vm0, %v183_v33  ;;  %v169_v29 = vld [vmem:[#allocation2 + $0xf8] sm:$0xff]  ;;  %v261_v30 = vmul.f32 0.70710677, %v165_v27 }
  0x4b   :  { %2319 = vmatpush3.xpose.msk.msra.mxu0 %vm266_vm0, %v179_v31  ;;  %v265_v31 = vmul.f32 0.70710677, %v169_v29 }
  0x4c   :  { %2320 = vmatprep.subr.msk.mxu0 %vm266_vm0, %v178_v34 }
  0x4d   :  { %2333 = vmatpush3.xpose.msk.msra.mxu1 %vm266_vm0, %v183_v33 }
  0x4e   :  { %2334 = vmatprep.subr.msk.mxu1 %vm266_vm0, %v182_v35 }
  0x4f   :  { %2321 = vmatpush3.xpose.msk.msra.mxu0 %vm266_vm0, %v178_v34 }
  0x50   :  { %2342 = vmatprep.subr.msk.mxu0 %vm266_vm0, %v189_v38 }
  0x51   :  { %2335 = vmatpush3.xpose.msk.msra.mxu1 %vm266_vm0, %v182_v35 }
  0x52   :  { %2356 = vmatprep.subr.msk.mxu1 %vm266_vm0, %v193_v40  ;;  %2323 = vmatmul.mubr.msk.f32.vlgmr.msra.gmra.mxu0 %vm266_vm0, %v243_v39 }
  0x53   :  { %2343 = vmatpush3.xpose.msk.msra.mxu0 %vm266_vm0, %v189_v38  ;;  %2325 = vmatprep.mubr.msk.f32.mxu0 %vm266_vm0, %v244_v47 }
  0x54   :  { %2337 = vmatmul.mubr.msk.f32.vlgmr.msra.gmra.mxu1 %vm266_vm0, %v247_v42  ;;  %2344 = vmatprep.subr.msk.mxu0 %vm266_vm0, %v188_v46 }
  0x55   :  { %2357 = vmatpush3.xpose.msk.msra.mxu1 %vm266_vm0, %v193_v40  ;;  %2339 = vmatprep.mubr.msk.f32.mxu1 %vm266_vm0, %v248_v50 }
  0x56   :  { %2358 = vmatprep.subr.msk.mxu1 %vm266_vm0, %v192_v49  ;;  %2326 = vmatmul.mubr.msk.f32.gmra.mxu0 %vm266_vm0, %v245_v48 }
  0x57   :  { %2345 = vmatpush3.xpose.msk.msra.mxu0 %vm266_vm0, %v188_v46  ;;  %2350 = vmatprep.mubr.msk.f32.mxu0 %vm266_vm0, %v250_v55 }
  0x58   :  { %2340 = vmatmul.mubr.msk.f32.gmra.mxu1 %vm266_vm0, %v249_v52  ;;  %2346 = vmatprep.subr.msk.mxu0 %vm266_vm0, %v187_v54 }
  0x59   :  { %2359 = vmatpush3.xpose.msk.msra.mxu1 %vm266_vm0, %v192_v49  ;;  %2364 = vmatprep.mubr.msk.f32.mxu1 %vm266_vm0, %v254_v57 }
  0x5a   :  { %2360 = vmatprep.subr.msk.mxu1 %vm266_vm0, %v191_v56 }
  0x5b   :  { %2347 = vmatpush3.xpose.msk.msra.mxu0 %vm266_vm0, %v187_v54 }
  0x5c   :  { %2348 = vmatprep.subr.msk.mxu0 %vm266_vm0, %v186_v58 }
  0x5d   :  { %2361 = vmatpush3.xpose.msk.msra.mxu1 %vm266_vm0, %v191_v56 }
  0x5e   :  { %2362 = vmatprep.subr.msk.mxu1 %vm266_vm0, %v190_v59 }
  0x5f   :  { %2349 = vmatpush3.xpose.msk.msra.mxu0 %vm266_vm0, %v186_v58 }
  0x60   :  { %2370 = vmatprep.subr.msk.mxu0 %vm266_vm0, %v197_v62 }
  0x61   :  { %2363 = vmatpush3.xpose.msk.msra.mxu1 %vm266_vm0, %v190_v59 }
  0x62   :  { %2384 = vmatprep.subr.msk.mxu1 %vm266_vm0, %v201_v0  ;;  %2351 = vmatmul.mubr.msk.f32.vlgmr.msra.gmra.mxu0 %vm266_vm0, %v251_v63 }
  0x63   :  { %2371 = vmatpush3.xpose.msk.msra.mxu0 %vm266_vm0, %v197_v62  ;;  %2353 = vmatprep.mubr.msk.f32.mxu0 %vm266_vm0, %v252_v7 }
  0x64   :  { %2365 = vmatmul.mubr.msk.f32.vlgmr.msra.gmra.mxu1 %vm266_vm0, %v255_v2  ;;  %2372 = vmatprep.subr.msk.mxu0 %vm266_vm0, %v196_v6 }
  0x65   :  { %2385 = vmatpush3.xpose.msk.msra.mxu1 %vm266_vm0, %v201_v0  ;;  %2367 = vmatprep.mubr.msk.f32.mxu1 %vm266_vm0, %v256_v10 }
  0x66   :  { %2386 = vmatprep.subr.msk.mxu1 %vm266_vm0, %v200_v9  ;;  %2354 = vmatmul.mubr.msk.f32.gmra.mxu0 %vm266_vm0, %v253_v8 }
  0x67   :  { %2373 = vmatpush3.xpose.msk.msra.mxu0 %vm266_vm0, %v196_v6  ;;  %2378 = vmatprep.mubr.msk.f32.mxu0 %vm266_vm0, %v258_v15 }
  0x68   :  { %2368 = vmatmul.mubr.msk.f32.gmra.mxu1 %vm266_vm0, %v257_v12  ;;  %2374 = vmatprep.subr.msk.mxu0 %vm266_vm0, %v195_v14 }
  0x69   :  { %2387 = vmatpush3.xpose.msk.msra.mxu1 %vm266_vm0, %v200_v9  ;;  %2392 = vmatprep.mubr.msk.f32.mxu1 %vm266_vm0, %v262_v17 }
  0x6a   :  { %2388 = vmatprep.subr.msk.mxu1 %vm266_vm0, %v199_v16 }
  0x6b   :  { %2375 = vmatpush3.xpose.msk.msra.mxu0 %vm266_vm0, %v195_v14 }
  0x6c   :  { %2376 = vmatprep.subr.msk.mxu0 %vm266_vm0, %v194_v18 }
  0x6d   :  { %2389 = vmatpush3.xpose.msk.msra.mxu1 %vm266_vm0, %v199_v16 }
  0x6e   :  { %2390 = vmatprep.subr.msk.mxu1 %vm266_vm0, %v198_v19 }
  0x6f   :  { %2377 = vmatpush3.xpose.msk.msra.mxu0 %vm266_vm0, %v194_v18 }
  0x71   :  { %2391 = vmatpush3.xpose.msk.msra.mxu1 %vm266_vm0, %v198_v19 }
  0x72   :  { %2379 = vmatmul.mubr.msk.f32.vlgmr.msra.gmra.mxu0 %vm266_vm0, %v259_v24 }
  0x73   :  { %2381 = vmatprep.mubr.msk.f32.mxu0 %vm266_vm0, %v260_v26 }
  0x74   :  { %2393 = vmatmul.mubr.msk.f32.vlgmr.msra.gmra.mxu1 %vm266_vm0, %v263_v25 }
  0x75   :  { %2395 = vmatprep.mubr.msk.f32.mxu1 %vm266_vm0, %v264_v28 }
  0x76   :  { %2382 = vmatmul.mubr.msk.f32.gmra.mxu0 %vm266_vm0, %v261_v30 }
  0x78   :  { %2396 = vmatmul.mubr.msk.f32.gmra.mxu1 %vm266_vm0, %v265_v31 }
 0x102   :  { %v2857_v32 = vpop.f32.mrf.mxu0 }
 0x103   :  { %v2859_v33 = vpop.f32.mrf.mxu1  ;;  %v1142_v35 = vsel %vm266_vm0, %v2857_v32, -inf }
 0x104   :  { %v1154_v34 = vsel %vm266_vm0, %v2859_v33, -inf  ;;  %1143 = vmax.xlane.f32.xlu0 %v1142_v35  ;;  %v2865_v36 = vpop.f32.mrf.mxu0 }
 0x105   :  { %1155 = vmax.xlane.f32.xlu1 %v1154_v34  ;;  %v2867_v37 = vpop.f32.mrf.mxu1  ;;  %v1139_v41 = vsel %vm266_vm0, %v2865_v36, -inf }
 0x106   :  { %v1151_v38 = vsel %vm266_vm0, %v2867_v37, -inf  ;;  %v2871_v39 = vpop.f32.mrf.mxu0 }
 0x107   :  { %v2873_v40 = vpop.f32.mrf.mxu1  ;;  %v1148_v43 = vsel %vm266_vm0, %v2871_v39, -inf }
 0x108   :  { %1140 = vmax.xlane.f32.xlu0 %v1139_v41  ;;  %v2877_v42 = vpop.f32.mrf.mxu0  ;;  %v1160_v46 = vsel %vm266_vm0, %v2873_v40, -inf }
 0x109   :  { %1152 = vmax.xlane.f32.xlu1 %v1151_v38  ;;  %v1145_v44 = vsel %vm266_vm0, %v2877_v42, -inf  ;;  %v2883_v45 = vpop.f32.mrf.mxu1 }
 0x10a   :  { %v1157_v47 = vsel %vm266_vm0, %v2883_v45, -inf }
 0x10c   :  { %1146 = vmax.xlane.f32.xlu0 %v1145_v44 }
 0x10d   :  { %1149 = vmax.xlane.f32.xlu1 %v1148_v43 }
 0x110   :  { %1158 = vmax.xlane.f32.xlu0 %v1157_v47 }
 0x111   :  { %1161 = vmax.xlane.f32.xlu1 %v1160_v46 }
 0x112   :  { %v2889_v48 = vpop.f32.mrf.mxu0 }
 0x113   :  { %v1166_v49 = vsel %vm266_vm0, %v2889_v48, -inf }
 0x114   :  { %v2893_v50 = vpop.f32.mrf.mxu1  ;;  %v2895_v51 = vpop.f32.mrf.mxu0 }
 0x115   :  { %1167 = vmax.xlane.f32.xlu1 %v1166_v49  ;;  %v1163_v52 = vsel %vm266_vm0, %v2895_v51, -inf  ;;  %v1178_v54 = vsel %vm266_vm0, %v2893_v50, -inf }
 0x116   :  { %v2899_v53 = vpop.f32.mrf.mxu1  ;;  %1164 = vmax.xlane.f32.xlu0 %v1163_v52  ;;  %v2903_v55 = vpop.f32.mrf.mxu0 }
 0x117   :  { %v1175_v56 = vsel %vm266_vm0, %v2899_v53, -inf  ;;  %v1172_v59 = vsel %vm266_vm0, %v2903_v55, -inf }
 0x118   :  { %v2907_v57 = vpop.f32.mrf.mxu0  ;;  %v2909_v58 = vpop.f32.mrf.mxu1 }
 0x119   :  { %1179 = vmax.xlane.f32.xlu1 %v1178_v54  ;;  %v1169_v60 = vsel %vm266_vm0, %v2907_v57, -inf  ;;  %v1184_v62 = vsel %vm266_vm0, %v2909_v58, -inf }
 0x11a   :  { %1176 = vmax.xlane.f32.xlu0 %v1175_v56  ;;  %v2915_v61 = vpop.f32.mrf.mxu1 }
 0x11b   :  { %v1181_v63 = vsel %vm266_vm0, %v2915_v61, -inf }
 0x11d   :  { %1173 = vmax.xlane.f32.xlu1 %v1172_v59 }
 0x11e   :  { %1170 = vmax.xlane.f32.xlu0 %v1169_v60 }
 0x121   :  { %1185 = vmax.xlane.f32.xlu1 %v1184_v62 }
 0x122   :  { %1182 = vmax.xlane.f32.xlu0 %v1181_v63  ;;  %v2921_v0 = vpop.f32.mrf.mxu0 }
 0x123   :  { %v1190_v1 = vsel %vm266_vm0, %v2921_v0, -inf }
 0x124   :  { %v2925_v2 = vpop.f32.mrf.mxu1  ;;  %v2927_v3 = vpop.f32.mrf.mxu0 }
 0x125   :  { %1191 = vmax.xlane.f32.xlu1 %v1190_v1  ;;  %v1187_v4 = vsel %vm266_vm0, %v2927_v3, -inf  ;;  %v1202_v6 = vsel %vm266_vm0, %v2925_v2, -inf }
 0x126   :  { %v2931_v5 = vpop.f32.mrf.mxu1  ;;  %1188 = vmax.xlane.f32.xlu0 %v1187_v4  ;;  %v2935_v7 = vpop.f32.mrf.mxu0 }
 0x127   :  { %v1199_v8 = vsel %vm266_vm0, %v2931_v5, -inf  ;;  %v1196_v11 = vsel %vm266_vm0, %v2935_v7, -inf }
 0x128   :  { %v2939_v9 = vpop.f32.mrf.mxu0  ;;  %v2941_v10 = vpop.f32.mrf.mxu1 }
 0x129   :  { %1203 = vmax.xlane.f32.xlu1 %v1202_v6  ;;  %v1193_v12 = vsel %vm266_vm0, %v2939_v9, -inf  ;;  %v1208_v14 = vsel %vm266_vm0, %v2941_v10, -inf }
 0x12a   :  { %1200 = vmax.xlane.f32.xlu0 %v1199_v8  ;;  %v2947_v13 = vpop.f32.mrf.mxu1 }
 0x12b   :  { %v1205_v15 = vsel %vm266_vm0, %v2947_v13, -inf }
 0x12d   :  { %1197 = vmax.xlane.f32.xlu1 %v1196_v11 }
 0x12e   :  { %1194 = vmax.xlane.f32.xlu0 %v1193_v12 }
 0x131   :  { %1209 = vmax.xlane.f32.xlu1 %v1208_v14 }
 0x132   :  { %1206 = vmax.xlane.f32.xlu0 %v1205_v15  ;;  %v2953_v16 = vpop.f32.mrf.mxu0 }
 0x133   :  { %v1214_v17 = vsel %vm266_vm0, %v2953_v16, -inf }
 0x134   :  { %v2957_v18 = vpop.f32.mrf.mxu1  ;;  %v2959_v19 = vpop.f32.mrf.mxu0 }
 0x135   :  { %1215 = vmax.xlane.f32.xlu1 %v1214_v17  ;;  %v1211_v20 = vsel %vm266_vm0, %v2959_v19, -inf  ;;  %v1226_v22 = vsel %vm266_vm0, %v2957_v18, -inf }
 0x136   :  { %v2963_v21 = vpop.f32.mrf.mxu1  ;;  %1212 = vmax.xlane.f32.xlu0 %v1211_v20  ;;  %v2967_v23 = vpop.f32.mrf.mxu0 }
 0x137   :  { %v1223_v24 = vsel %vm266_vm0, %v2963_v21, -inf  ;;  %v1220_v27 = vsel %vm266_vm0, %v2967_v23, -inf }
 0x138   :  { %v2971_v25 = vpop.f32.mrf.mxu0  ;;  %v2973_v26 = vpop.f32.mrf.mxu1 }
 0x139   :  { %1227 = vmax.xlane.f32.xlu1 %v1226_v22  ;;  %v1217_v28 = vsel %vm266_vm0, %v2971_v25, -inf  ;;  %v1232_v30 = vsel %vm266_vm0, %v2973_v26, -inf }
 0x13a   :  { %1224 = vmax.xlane.f32.xlu0 %v1223_v24  ;;  %v2979_v29 = vpop.f32.mrf.mxu1 }
 0x13b   :  { %v1229_v31 = vsel %vm266_vm0, %v2979_v29, -inf }
 0x13d   :  { %1221 = vmax.xlane.f32.xlu1 %v1220_v27 }
 0x13e   :  { %1218 = vmax.xlane.f32.xlu0 %v1217_v28 }
 0x141   :  { %1233 = vmax.xlane.f32.xlu1 %v1232_v30 }
 0x142   :  { %1230 = vmax.xlane.f32.xlu0 %v1229_v31 }
 0x18d   :  { %v1144_v35 = vpop.xlane.xlu0 %1143 }
 0x18e   :  { %v1156_v34 = vpop.xlane.xlu1 %1155  ;;  %v1236_v41 = vsub.f32 %v2857_v32, %v1144_v35 }
 0x18f   :  { %v1240_v38 = vsub.f32 %v2859_v33, %v1156_v34 }
 0x190   :  { %v1269_v43 = vmul.f32 1.442695, %v1236_v41 }
 0x191   :  { %v1277_v44 = vmul.f32 1.442695, %v1240_v38  ;;  %v1141_v47 = vpop.xlane.xlu0 %1140 }
 0x192   :  { %v1153_v46 = vpop.xlane.xlu1 %1152  ;;  %v1235_v52 = vsub.f32 %v2865_v36, %v1141_v47  ;;  %2469 = vpow2.f32 %v1269_v43 }
 0x193   :  { %v1239_v49 = vsub.f32 %v2867_v37, %v1153_v46  ;;  %2471 = vpow2.f32 %v1277_v44 }
 0x194   :  { %v1267_v54 = vmul.f32 1.442695, %v1235_v52 }
 0x195   :  { %v1275_v56 = vmul.f32 1.442695, %v1239_v49  ;;  %v1147_v60 = vpop.xlane.xlu0 %1146 }
 0x196   :  { %v1150_v59 = vpop.xlane.xlu1 %1149  ;;  %v1237_v33 = vsub.f32 %v2877_v42, %v1147_v60  ;;  %2473 = vpow2.f32 %v1267_v54 }
 0x197   :  { %v1238_v62 = vsub.f32 %v2871_v39, %v1150_v59  ;;  %2475 = vpow2.f32 %v1275_v56 }
 0x198   :  { %v1271_v63 = vmul.f32 1.442695, %v1237_v33 }
 0x199   :  { %v1273_v32 = vmul.f32 1.442695, %v1238_v62  ;;  %v1159_v4 = vpop.xlane.xlu0 %1158 }
 0x19a   :  { %v1162_v1 = vpop.xlane.xlu1 %1161  ;;  %v1241_v36 = vsub.f32 %v2883_v45, %v1159_v4 }
 0x19b   :  { %2477 = vpow2.f32 %v1273_v32  ;;  %v1242_v37 = vsub.f32 %v2873_v40, %v1162_v1 }
 0x19c   :  { %2479 = vpow2.f32 %v1271_v63  ;;  %v1279_v8 = vmul.f32 1.442695, %v1241_v36 }
 0x19d   :  { %v1281_v6 = vmul.f32 1.442695, %v1242_v37 }
 0x19e   :  { %v1168_v11 = vpop.xlane.xlu1 %1167 }
 0x19f   :  { %2481 = vpow2.f32 %v1281_v6  ;;  %v1244_v39 = vsub.f32 %v2889_v48, %v1168_v11  ;;  %v1165_v12 = vpop.xlane.xlu0 %1164  ;;  %v2994_v42 = vpop.eup %2469 }
 0x1a0   :  { %v1243_v15 = vsub.f32 %v2895_v51, %v1165_v12  ;;  %2483 = vpow2.f32 %v1279_v8  ;;  %v1334_v40 = vsel %vm266_vm0, %v2994_v42, 0.0  ;;  %v2999_v20 = vpop.eup %2471 }
 0x1a1   :  { %v1285_v14 = vmul.f32 1.442695, %v1244_v39  ;;  %1335 = vadd.xlane.f32.xlu1 %v1334_v40  ;;  %v1346_v30 = vsel %vm266_vm0, %v2999_v20, 0.0 }
 0x1a2   :  { %v1180_v17 = vpop.xlane.xlu1 %1179  ;;  %v1283_v45 = vmul.f32 1.442695, %v1243_v15 }
 0x1a3   :  { %2485 = vpow2.f32 %v1285_v14  ;;  %v1248_v22 = vsub.f32 %v2893_v50, %v1180_v17  ;;  %v1177_v24 = vpop.xlane.xlu0 %1176  ;;  %v3002_v48 = vpop.eup %2473 }
 0x1a4   :  { %v1247_v28 = vsub.f32 %v2899_v53, %v1177_v24  ;;  %2487 = vpow2.f32 %v1283_v45  ;;  %v1331_v31 = vsel %vm266_vm0, %v3002_v48, 0.0  ;;  %v3009_v34 = vpop.eup %2475 }
 0x1a5   :  { %v1293_v27 = vmul.f32 1.442695, %v1248_v22  ;;  %1347 = vadd.xlane.f32.xlu1 %v1346_v30  ;;  %1332 = vadd.xlane.f32.xlu0 %v1331_v31  ;;  %v1343_v47 = vsel %vm266_vm0, %v3009_v34, 0.0 }
 0x1a6   :  { %v1174_v51 = vpop.xlane.xlu1 %1173  ;;  %v1291_v35 = vmul.f32 1.442695, %v1247_v28 }
 0x1a7   :  { %2489 = vpow2.f32 %v1293_v27  ;;  %v1246_v50 = vsub.f32 %v2903_v55, %v1174_v51  ;;  %v1171_v41 = vpop.xlane.xlu0 %1170 }
 0x1a8   :  { %v3012_v38 = vpop.eup %2477  ;;  %v1245_v43 = vsub.f32 %v2907_v57, %v1171_v41  ;;  %2491 = vpow2.f32 %v1291_v35 }
 0x1a9   :  { %v1289_v53 = vmul.f32 1.442695, %v1246_v50  ;;  %v1340_v44 = vsel %vm266_vm0, %v3012_v38, 0.0  ;;  %v3019_v49 = vpop.eup %2479  ;;  %1344 = vadd.xlane.f32.xlu0 %v1343_v47 }
 0x1aa   :  { %v1186_v46 = vpop.xlane.xlu1 %1185  ;;  %v1287_v55 = vmul.f32 1.442695, %v1245_v43  ;;  %1341 = vadd.xlane.f32.xlu1 %v1340_v44  ;;  %v1337_v33 = vsel %vm266_vm0, %v3019_v49, 0.0 }
 0x1ab   :  { %2493 = vpow2.f32 %v1289_v53  ;;  %v1250_v52 = vsub.f32 %v2909_v58, %v1186_v46  ;;  %v1183_v56 = vpop.xlane.xlu0 %1182 }
 0x1ac   :  { %v3022_v54 = vpop.eup %2481  ;;  %v1249_v59 = vsub.f32 %v2915_v61, %v1183_v56  ;;  %2495 = vpow2.f32 %v1287_v55 }
 0x1ad   :  { %v1297_v57 = vmul.f32 1.442695, %v1250_v52  ;;  %v1352_v60 = vsel %vm266_vm0, %v3022_v54, 0.0  ;;  %v3029_v32 = vpop.eup %2483  ;;  %1338 = vadd.xlane.f32.xlu0 %v1337_v33 }
 0x1ae   :  { %v1192_v62 = vpop.xlane.xlu1 %1191  ;;  %v1295_v58 = vmul.f32 1.442695, %v1249_v59  ;;  %1353 = vadd.xlane.f32.xlu1 %v1352_v60  ;;  %v1349_v8 = vsel %vm266_vm0, %v3029_v32, 0.0 }
 0x1af   :  { %2497 = vpow2.f32 %v1297_v57  ;;  %v1252_v63 = vsub.f32 %v2921_v0, %v1192_v62  ;;  %v1189_v4 = vpop.xlane.xlu0 %1188 }
 0x1b0   :  { %v3032_v1 = vpop.eup %2485  ;;  %v1251_v37 = vsub.f32 %v2927_v3, %v1189_v4  ;;  %2499 = vpow2.f32 %v1295_v58 }
 0x1b1   :  { %v1301_v61 = vmul.f32 1.442695, %v1252_v63  ;;  %v1358_v36 = vsel %vm266_vm0, %v3032_v1, 0.0  ;;  %v3039_v11 = vpop.eup %2487  ;;  %1350 = vadd.xlane.f32.xlu0 %v1349_v8 }
 0x1b2   :  { %v1204_v6 = vpop.xlane.xlu1 %1203  ;;  %v1299_v0 = vmul.f32 1.442695, %v1251_v37  ;;  %1359 = vadd.xlane.f32.xlu1 %v1358_v36  ;;  %v1355_v45 = vsel %vm266_vm0, %v3039_v11, 0.0  ;;  %v205_v36 = vld [vmem:[#allocation7 + $0x18] sm:$0xff] }
 0x1b3   :  { %2501 = vpow2.f32 %v1301_v61  ;;  %v1256_v39 = vsub.f32 %v2925_v2, %v1204_v6  ;;  %v1201_v14 = vpop.xlane.xlu0 %1200 }
 0x1b4   :  { %v3042_v12 = vpop.eup %2489  ;;  %v1255_v15 = vsub.f32 %v2931_v5, %v1201_v14  ;;  %2503 = vpow2.f32 %v1299_v0 }
 0x1b5   :  { %v1309_v3 = vmul.f32 1.442695, %v1256_v39  ;;  %v1370_v17 = vsel %vm266_vm0, %v3042_v12, 0.0  ;;  %v3049_v22 = vpop.eup %2491  ;;  %1356 = vadd.xlane.f32.xlu0 %v1355_v45  ;;  %v202_v45 = vld [vmem:[#allocation7] sm:$0xff] }
 0x1b6   :  { %v1198_v40 = vpop.xlane.xlu1 %1197  ;;  %v1307_v2 = vmul.f32 1.442695, %v1255_v15  ;;  %1371 = vadd.xlane.f32.xlu1 %v1370_v17  ;;  %v1367_v35 = vsel %vm266_vm0, %v3049_v22, 0.0 }
 0x1b7   :  { %2505 = vpow2.f32 %v1309_v3  ;;  %v1254_v24 = vsub.f32 %v2935_v7, %v1198_v40  ;;  %v1195_v28 = vpop.xlane.xlu0 %1194 }
 0x1b8   :  { %v3052_v27 = vpop.eup %2493  ;;  %v1253_v51 = vsub.f32 %v2939_v9, %v1195_v28  ;;  %2507 = vpow2.f32 %v1307_v2  ;;  %v203_v2 = vld [vmem:[#allocation7 + $0x8] sm:$0xff] }
 0x1b9   :  { %v1305_v5 = vmul.f32 1.442695, %v1254_v24  ;;  %v1364_v30 = vsel %vm266_vm0, %v3052_v27, 0.0  ;;  %v3059_v50 = vpop.eup %2495  ;;  %1368 = vadd.xlane.f32.xlu0 %v1367_v35  ;;  %v1603_v35 = vpack.c.bf16 %v203_v2, %v202_v45 }
 0x1ba   :  { %v1210_v31 = vpop.xlane.xlu1 %1209  ;;  %v1303_v7 = vmul.f32 1.442695, %v1253_v51  ;;  %1365 = vadd.xlane.f32.xlu1 %v1364_v30  ;;  %v1361_v55 = vsel %vm266_vm0, %v3059_v50, 0.0  ;;  %v208_v51 = vld [vmem:[#allocation7 + $0x30] sm:$0xff]  ;;  %v209_v30 = vld [vmem:[#allocation7 + $0x38] sm:$0xff] }
 0x1bb   :  { %2509 = vpow2.f32 %v1305_v5  ;;  %v1258_v41 = vsub.f32 %v2941_v10, %v1210_v31  ;;  %v1207_v43 = vpop.xlane.xlu0 %1206 }
 0x1bc   :  { %v3062_v53 = vpop.eup %2497  ;;  %v1257_v44 = vsub.f32 %v2947_v13, %v1207_v43  ;;  %2511 = vpow2.f32 %v1303_v7  ;;  %v1606_v7 = vpack.c.bf16 %v209_v30, %v208_v51 }
 0x1bd   :  { %v1313_v9 = vmul.f32 1.442695, %v1258_v41  ;;  %v1376_v46 = vsel %vm266_vm0, %v3062_v53, 0.0  ;;  %v3069_v52 = vpop.eup %2499  ;;  %1362 = vadd.xlane.f32.xlu0 %v1361_v55 }
 0x1be   :  { %v1216_v47 = vpop.xlane.xlu1 %1215  ;;  %v1311_v10 = vmul.f32 1.442695, %v1257_v44  ;;  %1377 = vadd.xlane.f32.xlu1 %v1376_v46  ;;  %v1373_v58 = vsel %vm266_vm0, %v3069_v52, 0.0  ;;  %2406 = vmatprep.subr.bf16.mxu1 %v1606_v7  ;;  %v206_v46 = vld [vmem:[#allocation7 + $0x20] sm:$0xff] }
 0x1bf   :  { %2513 = vpow2.f32 %v1313_v9  ;;  %v1260_v56 = vsub.f32 %v2953_v16, %v1216_v47  ;;  %v1213_v59 = vpop.xlane.xlu0 %1212  ;;  %v207_v47 = vld [vmem:[#allocation7 + $0x28] sm:$0xff]  ;;  %2407 = vmatpush3.bf16.msra.mxu1 %v1606_v7 }
 0x1c0   :  { %v3072_v57 = vpop.eup %2501  ;;  %v1259_v60 = vsub.f32 %v2959_v19, %v1213_v59  ;;  %2515 = vpow2.f32 %v1311_v10  ;;  %v204_v19 = vld [vmem:[#allocation7 + $0x10] sm:$0xff]  ;;  %v1605_v59 = vpack.c.bf16 %v207_v47, %v206_v46 }
 0x1c1   :  { %v1317_v13 = vmul.f32 1.442695, %v1260_v56  ;;  %v1382_v62 = vsel %vm266_vm0, %v3072_v57, 0.0  ;;  %v3079_v63 = vpop.eup %2503  ;;  %1374 = vadd.xlane.f32.xlu0 %v1373_v58  ;;  %v1604_v3 = vpack.c.bf16 %v205_v36, %v204_v19 }
 0x1c2   :  { %v1228_v33 = vpop.xlane.xlu1 %1227  ;;  %v1315_v16 = vmul.f32 1.442695, %v1259_v60  ;;  %1383 = vadd.xlane.f32.xlu1 %v1382_v62  ;;  %v1379_v14 = vsel %vm266_vm0, %v3079_v63, 0.0  ;;  %2408 = vmatprep.subr.bf16.mxu1 %v1605_v59 }
 0x1c3   :  { %2517 = vpow2.f32 %v1317_v13  ;;  %v1264_v4 = vsub.f32 %v2957_v18, %v1228_v33  ;;  %v1225_v37 = vpop.xlane.xlu0 %1224  ;;  %2398 = vmatprep.subr.bf16.mxu0 %v1604_v3  ;;  %2409 = vmatpush3.bf16.msra.mxu1 %v1605_v59 }
 0x1c4   :  { %v3082_v61 = vpop.eup %2505  ;;  %v1263_v8 = vsub.f32 %v2963_v21, %v1225_v37  ;;  %2519 = vpow2.f32 %v1315_v16  ;;  %2399 = vmatpush3.bf16.msra.mxu0 %v1604_v3  ;;  %v213_v37 = vld [vmem:[#allocation7 + $0x58] sm:$0xff] }
 0x1c5   :  { %v1325_v6 = vmul.f32 1.442695, %v1264_v4  ;;  %v1394_v0 = vsel %vm266_vm0, %v3082_v61, 0.0  ;;  %v3089_v18 = vpop.eup %2507  ;;  %1380 = vadd.xlane.f32.xlu0 %v1379_v14  ;;  %2400 = vmatprep.subr.bf16.mxu0 %v1603_v35  ;;  %v212_v4 = vld [vmem:[#allocation7 + $0x50] sm:$0xff]  ;;  %v217_v3 = vld [vmem:[#allocation7 + $0x78] sm:$0xff] }
 0x1c6   :  { %v1222_v39 = vpop.xlane.xlu1 %1221  ;;  %v1323_v15 = vmul.f32 1.442695, %v1263_v8  ;;  %1395 = vadd.xlane.f32.xlu1 %v1394_v0  ;;  %v3123_v36 = vpack.c.bf16 %v213_v37, %v212_v4  ;;  %v216_v14 = vld [vmem:[#allocation7 + $0x70] sm:$0xff] }
 0x1c7   :  { %2521 = vpow2.f32 %v1325_v6  ;;  %v1262_v17 = vsub.f32 %v2967_v23, %v1222_v39  ;;  %v1219_v21 = vpop.xlane.xlu0 %1218  ;;  %v1391_v23 = vsel %vm266_vm0, %v3089_v18, 0.0 }
 0x1c8   :  { %v3092_v40 = vpop.eup %2509  ;;  %v1261_v28 = vsub.f32 %v2971_v25, %v1219_v21  ;;  %2523 = vpow2.f32 %v1323_v15  ;;  %2401 = vmatpush3.bf16.msra.mxu0 %v1603_v35 }
 0x1c9   :  { %v1321_v24 = vmul.f32 1.442695, %v1262_v17  ;;  %v1388_v5 = vsel %vm266_vm0, %v3092_v40, 0.0  ;;  %v3099_v41 = vpop.eup %2511  ;;  %1392 = vadd.xlane.f32.xlu0 %v1391_v23  ;;  %2414 = vmatprep.subr.bf16.mxu0 %v3123_v36  ;;  %v3136_v17 = vpack.c.bf16 %v217_v3, %v216_v14 }
 0x1ca   :  { %v1234_v31 = vpop.xlane.xlu1 %1233  ;;  %v1319_v43 = vmul.f32 1.442695, %v1261_v28  ;;  %1389 = vadd.xlane.f32.xlu1 %v1388_v5 }
 0x1cb   :  { %2525 = vpow2.f32 %v1321_v24  ;;  %v1266_v25 = vsub.f32 %v2973_v26, %v1234_v31  ;;  %v1231_v44 = vpop.xlane.xlu0 %1230  ;;  %v1385_v26 = vsel %vm266_vm0, %v3099_v41, 0.0  ;;  %2422 = vmatprep.subr.bf16.mxu1 %v3136_v17 }
 0x1cc   :  { %v3102_v9 = vpop.eup %2513  ;;  %v1265_v10 = vsub.f32 %v2979_v29, %v1231_v44  ;;  %2527 = vpow2.f32 %v1319_v43 }
 0x1cd   :  { %v1329_v55 = vmul.f32 1.442695, %v1266_v25  ;;  %v1400_v56 = vsel %vm266_vm0, %v3102_v9, 0.0  ;;  %v3109_v13 = vpop.eup %2515  ;;  %1386 = vadd.xlane.f32.xlu0 %v1385_v26 }
 0x1ce   :  { %v1327_v60 = vmul.f32 1.442695, %v1265_v10  ;;  %1401 = vadd.xlane.f32.xlu1 %v1400_v56  ;;  %v1397_v33 = vsel %vm266_vm0, %v3109_v13, 0.0  ;;  %v74_v56 = vld [vmem:[#allocation8] sm:$0xff] }
 0x1cf   :  { %2529 = vpow2.f32 %v1329_v55  ;;  %v75_v55 = vld [vmem:[#allocation8 + $0x8] sm:$0xff]  ;;  %vm106_vm2 = vcmp.ge.u32.totalorder %v74_v56, 858993459 }
 0x1d0   :  { %v3111_v62 = vpop.eup %2517  ;;  %2531 = vpow2.f32 %v1327_v60  ;;  %vm107_vm1 = vcmp.ge.u32.totalorder %v75_v55, 858993459 }
 0x1d1   :  { %v1406_v29 = vsel %vm266_vm0, %v3111_v62, 0.0  ;;  %v3117_v58 = vpop.eup %2519  ;;  %1398 = vadd.xlane.f32.xlu0 %v1397_v33 }
 0x1d2   :  { %1407 = vadd.xlane.f32.xlu1 %v1406_v29  ;;  %v1403_v6 = vsel %vm266_vm0, %v3117_v58, 0.0 }
 0x1d4   :  { %v3119_v16 = vpop.eup %2521 }
 0x1d5   :  { %v1418_v19 = vsel %vm266_vm0, %v3119_v16, 0.0  ;;  %v3127_v8 = vpop.eup %2523  ;;  %1404 = vadd.xlane.f32.xlu0 %v1403_v6 }
 0x1d6   :  { %1419 = vadd.xlane.f32.xlu1 %v1418_v19  ;;  %v1415_v15 = vsel %vm266_vm0, %v3127_v8, 0.0  ;;  %v79_v19 = vld [vmem:[#allocation8 + $0x28] sm:$0xff] }
 0x1d7   :  { %vm111_vm3 = vcmp.ge.u32.totalorder %v79_v19, 858993459  ;;  %v83_v19 = vld [vmem:[#allocation8 + $0x48] sm:$0xff] }
 0x1d8   :  { %v3129_v0 = vpop.eup %2525  ;;  %vm115_vm9 = vcmp.ge.u32.totalorder %v83_v19, 858993459 }
 0x1d9   :  { %v1412_v39 = vsel %vm266_vm0, %v3129_v0, 0.0  ;;  %v3138_v21 = vpop.eup %2527  ;;  %1416 = vadd.xlane.f32.xlu0 %v1415_v15 }
 0x1da   :  { %1413 = vadd.xlane.f32.xlu1 %v1412_v39  ;;  %v1409_v24 = vsel %vm266_vm0, %v3138_v21, 0.0  ;;  %v78_v39 = vld [vmem:[#allocation8 + $0x20] sm:$0xff] }
 0x1db   :  { %vm110_vm4 = vcmp.ge.u32.totalorder %v78_v39, 858993459 }
 0x1dc   :  { %v3140_v45 = vpop.eup %2529 }
 0x1dd   :  { %v1424_v2 = vsel %vm266_vm0, %v3140_v45, 0.0  ;;  %v3147_v28 = vpop.eup %2531  ;;  %1410 = vadd.xlane.f32.xlu0 %v1409_v24 }
 0x1de   :  { %1425 = vadd.xlane.f32.xlu1 %v1424_v2  ;;  %v1421_v5 = vsel %vm266_vm0, %v3147_v28, 0.0 }
 0x1e1   :  { %1422 = vadd.xlane.f32.xlu0 %v1421_v5 }
 0x22a   :  { %v1336_v51 = vpop.xlane.xlu1 %1335 }
 0x22b   :  { %2533 = vrcp.f32 %v1336_v51 }
 0x22e   :  { %v1348_v30 = vpop.xlane.xlu1 %1347  ;;  %v1333_v31 = vpop.xlane.xlu0 %1332 }
 0x22f   :  { %2535 = vrcp.f32 %v1348_v30 }
 0x230   :  { %2537 = vrcp.f32 %v1333_v31 }
 0x232   :  { %v1345_v35 = vpop.xlane.xlu0 %1344 }
 0x233   :  { %v1342_v23 = vpop.xlane.xlu1 %1341 }
 0x234   :  { %2539 = vrcp.f32 %v1342_v23  ;;  %v77_v23 = vld [vmem:[#allocation8 + $0x18] sm:$0xff] }
 0x235   :  { %2541 = vrcp.f32 %v1345_v35  ;;  %vm109_vm5 = vcmp.ge.u32.totalorder %v77_v23, 858993459 }
 0x236   :  { %v1339_v43 = vpop.xlane.xlu0 %1338 }
 0x237   :  { %v1354_v7 = vpop.xlane.xlu1 %1353 }
 0x238   :  { %2543 = vrcp.f32 %v1354_v7  ;;  %v2534_v25 = vpop.eup %2533 }
 0x239   :  { %2545 = vrcp.f32 %v1339_v43  ;;  %v1492_v44 = vmul.f32 1.25, %v2534_v25 }
 0x23a   :  { %v1351_v47 = vpop.xlane.xlu0 %1350 }
 0x23b   :  { %v1360_v46 = vpop.xlane.xlu1 %1359  ;;  %v1524_v59 = vmul.f32 %v2994_v42, %v1492_v44 }
 0x23c   :  { %2547 = vrcp.f32 %v1360_v46  ;;  %v2536_v10 = vpop.eup %2535  ;;  %v81_v46 = vld [vmem:[#allocation8 + $0x38] sm:$0xff] }
 0x23d   :  { %2549 = vrcp.f32 %v1351_v47  ;;  %v2538_v26 = vpop.eup %2537  ;;  %v1496_v60 = vmul.f32 1.25, %v2536_v10  ;;  %v1556_v3 = vsel %vm107_vm1, %v1524_v59, 0.0  ;;  %v80_v59 = vld [vmem:[#allocation8 + $0x30] sm:$0xff]  ;;  %vm113_vm7 = vcmp.ge.u32.totalorder %v81_v46, 858993459 }
 0x23e   :  { %v1491_v29 = vmul.f32 1.25, %v2538_v26  ;;  %v1357_v4 = vpop.xlane.xlu0 %1356  ;;  %vm112_vm8 = vcmp.ge.u32.totalorder %v80_v59, 858993459 }
 0x23f   :  { %v1372_v33 = vpop.xlane.xlu1 %1371  ;;  %v1528_v15 = vmul.f32 %v2999_v20, %v1496_v60  ;;  %v210_v60 = vld [vmem:[#allocation7 + $0x40] sm:$0xff] }
 0x240   :  { %2551 = vrcp.f32 %v1372_v33  ;;  %v1523_v6 = vmul.f32 %v3002_v48, %v1491_v29  ;;  %v76_v48 = vld [vmem:[#allocation8 + $0x10] sm:$0xff]  ;;  %v211_v29 = vld [vmem:[#allocation7 + $0x48] sm:$0xff] }
 0x241   :  { %v2540_v37 = vpop.eup %2539  ;;  %2553 = vrcp.f32 %v1357_v4  ;;  %v1560_v20 = vsel %vm111_vm3, %v1528_v15, 0.0  ;;  %vm108_vm6 = vcmp.ge.u32.totalorder %v76_v48, 858993459 }
 0x242   :  { %v2542_v14 = vpop.eup %2541  ;;  %v1555_v2 = vsel %vm106_vm2, %v1523_v6, 0.0  ;;  %v1494_v24 = vmul.f32 1.25, %v2540_v37  ;;  %v1369_v51 = vpop.xlane.xlu0 %1368 }
 0x243   :  { %v1495_v42 = vmul.f32 1.25, %v2542_v14  ;;  %v1366_v5 = vpop.xlane.xlu1 %1365  ;;  %v1587_v30 = vpack.c.bf16 %v1556_v3, %v1555_v2  ;;  %v82_v14 = vld [vmem:[#allocation8 + $0x40] sm:$0xff] }
 0x244   :  { %2555 = vrcp.f32 %v1366_v5  ;;  %v1526_v25 = vmul.f32 %v3012_v38, %v1494_v24  ;;  %v214_v24 = vld [vmem:[#allocation7 + $0x60] sm:$0xff]  ;;  %vm114_vm10 = vcmp.ge.u32.totalorder %v82_v14, 858993459 }
 0x245   :  { %v2544_v31 = vpop.eup %2543  ;;  %v1527_v35 = vmul.f32 %v3009_v34, %v1495_v42  ;;  %2557 = vrcp.f32 %v1369_v51  ;;  %2402 = vmatprep.mubr.msk.bf16.mxu0 %vm266_vm0, %v1587_v30  ;;  %v220_v51 = vld [vmem:[#allocation7 + $0x90] sm:$0xff]  ;;  %v221_v30 = vld [vmem:[#allocation7 + $0x98] sm:$0xff] }
 0x246   :  { %v2546_v7 = vpop.eup %2545  ;;  %v1498_v43 = vmul.f32 1.25, %v2544_v31  ;;  %v1363_v10 = vpop.xlane.xlu0 %1362  ;;  %v1558_v4 = vsel %vm109_vm5, %v1526_v25, 0.0 }
 0x247   :  { %v1559_v44 = vsel %vm110_vm4, %v1527_v35, 0.0  ;;  %v1493_v47 = vmul.f32 1.25, %v2546_v7  ;;  %v1378_v55 = vpop.xlane.xlu1 %1377  ;;  %v87_v7 = vld [vmem:[#allocation8 + $0x68] sm:$0xff] }
 0x248   :  { %2559 = vrcp.f32 %v1378_v55  ;;  %v1589_v56 = vpack.c.bf16 %v1560_v20, %v1559_v44  ;;  %v1530_v38 = vmul.f32 %v3022_v54, %v1498_v43  ;;  %v215_v54 = vld [vmem:[#allocation7 + $0x68] sm:$0xff]  ;;  %vm119_vm11 = vcmp.ge.u32.totalorder %v87_v7, 858993459 }
 0x249   :  { %v2548_v26 = vpop.eup %2547  ;;  %v1525_v34 = vmul.f32 %v3019_v49, %v1493_v47  ;;  %2561 = vrcp.f32 %v1363_v10  ;;  %v1607_v49 = vpack.c.bf16 %v211_v29, %v210_v60  ;;  %v1609_v46 = vpack.c.bf16 %v215_v54, %v214_v24 }
 0x24a   :  { %v2550_v33 = vpop.eup %2549  ;;  %2410 = vmatprep.mubr.msk.bf16.mxu1 %vm266_vm0, %v1589_v56  ;;  %v1500_v6 = vmul.f32 1.25, %v2548_v26  ;;  %v1375_v15 = vpop.xlane.xlu0 %1374  ;;  %v1562_v23 = vsel %vm113_vm7, %v1530_v38, 0.0  ;;  %v3166_v47 = vpack.c.bf16 %v221_v30, %v220_v51  ;;  %v86_v56 = vld [vmem:[#allocation8 + $0x60] sm:$0xff]  ;;  %v225_v26 = vld [vmem:[#allocation7 + $0xb8] sm:$0xff] }
 0x24b   :  { %v1557_v37 = vsel %vm108_vm6, %v1525_v34, 0.0  ;;  %v1497_v39 = vmul.f32 1.25, %v2550_v33  ;;  %v1384_v3 = vpop.xlane.xlu1 %1383  ;;  %v85_v33 = vld [vmem:[#allocation8 + $0x58] sm:$0xff]  ;;  %vm118_vm12 = vcmp.ge.u32.totalorder %v86_v56, 858993459  ;;  %v218_v30 = vld [vmem:[#allocation7 + $0x80] sm:$0xff] }
 0x24c   :  { %v1588_v2 = vpack.c.bf16 %v1558_v4, %v1557_v37  ;;  %2563 = vrcp.f32 %v1384_v3  ;;  %v1532_v35 = vmul.f32 %v3032_v1, %v1500_v6  ;;  %v224_v1 = vld [vmem:[#allocation7 + $0xb0] sm:$0xff]  ;;  %vm117_vm13 = vcmp.ge.u32.totalorder %v85_v33, 858993459 }
 0x24d   :  { %v2552_v42 = vpop.eup %2551  ;;  %v1529_v5 = vmul.f32 %v3029_v32, %v1497_v39  ;;  %2565 = vrcp.f32 %v1375_v15  ;;  %v3175_v6 = vpack.c.bf16 %v225_v26, %v224_v1  ;;  %v84_v39 = vld [vmem:[#allocation8 + $0x50] sm:$0xff]  ;;  %v223_v26 = vld [vmem:[#allocation7 + $0xa8] sm:$0xff] }
 0x24e   :  { %v2554_v31 = vpop.eup %2553  ;;  %2403 = vmatmul.mubr.msk.bf16.vlgmr.msra.gmra.mxu0 %vm266_vm0, %v1588_v2  ;;  %v1504_v43 = vmul.f32 1.25, %v2552_v42  ;;  %v1381_v32 = vpop.xlane.xlu0 %1380  ;;  %v89_v2 = vld [vmem:[#allocation8 + $0x78] sm:$0xff]  ;;  %vm116_vm14 = vcmp.ge.u32.totalorder %v84_v39, 858993459 }
 0x24f   :  { %v1561_v48 = vsel %vm112_vm8, %v1529_v5, 0.0  ;;  %v1499_v20 = vmul.f32 1.25, %v2554_v31  ;;  %v1396_v25 = vpop.xlane.xlu1 %1395  ;;  %2415 = vmatpush3.bf16.msra.mxu0 %v3123_v36  ;;  %v1564_v36 = vsel %vm115_vm9, %v1532_v35, 0.0  ;;  %v219_v31 = vld [vmem:[#allocation7 + $0x88] sm:$0xff]  ;;  %vm121_vm15 = vcmp.ge.u32.totalorder %v89_v2, 858993459 }
 0x250   :  { %v1590_v44 = vpack.c.bf16 %v1562_v23, %v1561_v48  ;;  %2567 = vrcp.f32 %v1396_v25  ;;  %2416 = vmatprep.subr.bf16.mxu0 %v1607_v49  ;;  %v1536_v60 = vmul.f32 %v3042_v12, %v1504_v43  ;;  %v91_v43 = vld [vmem:[#allocation8 + $0x88] sm:$0xff] }
 0x251   :  { %v2556_v55 = vpop.eup %2555  ;;  %v1531_v10 = vmul.f32 %v3039_v11, %v1499_v20  ;;  %2569 = vrcp.f32 %v1381_v32  ;;  %v90_v32 = vld [vmem:[#allocation8 + $0x80] sm:$0xff]  ;;  %vm123_vm2 = vcmp.ge.u32.totalorder %v91_v43, 858993459 }
 0x252   :  { %v2558_v34 = vpop.eup %2557  ;;  %v1502_v59 = vmul.f32 1.25, %v2556_v55  ;;  %2411 = vmatmul.mubr.msk.bf16.vlgmr.msra.gmra.mxu1 %vm266_vm0, %v1590_v44  ;;  %v1393_v37 = vpop.xlane.xlu0 %1392  ;;  %v1611_v55 = vpack.c.bf16 %v219_v31, %v218_v30  ;;  %vm122_vm3 = vcmp.ge.u32.totalorder %v90_v32, 858993459  ;;  %v92_v30 = vld [vmem:[#allocation8 + $0x90] sm:$0xff] }
 0x253   :  { %v1563_v29 = vsel %vm114_vm10, %v1531_v10, 0.0  ;;  %v1503_v38 = vmul.f32 1.25, %v2558_v34  ;;  %v1390_v4 = vpop.xlane.xlu1 %1389  ;;  %2417 = vmatpush3.bf16.msra.mxu0 %v1607_v49  ;;  %2423 = vmatpush3.bf16.msra.mxu1 %v3136_v17  ;;  %v1568_v17 = vsel %vm119_vm11, %v1536_v60, 0.0  ;;  %v222_v10 = vld [vmem:[#allocation7 + $0xa0] sm:$0xff]  ;;  %v228_v34 = vld [vmem:[#allocation7 + $0xd0] sm:$0xff] }
 0x254   :  { %2571 = vrcp.f32 %v1390_v4  ;;  %v1591_v11 = vpack.c.bf16 %v1564_v36, %v1563_v29  ;;  %2424 = vmatprep.subr.bf16.mxu1 %v1609_v46  ;;  %2430 = vmatprep.subr.bf16.mxu0 %v3166_v47  ;;  %v1534_v3 = vmul.f32 %v3052_v27, %v1502_v59  ;;  %v88_v27 = vld [vmem:[#allocation8 + $0x70] sm:$0xff]  ;;  %v229_v59 = vld [vmem:[#allocation7 + $0xd8] sm:$0xff]  ;;  %vm124_vm7 = vcmp.ge.u32.totalorder %v92_v30, 858993459 }
 0x255   :  { %v2560_v19 = vpop.eup %2559  ;;  %v1535_v12 = vmul.f32 %v3049_v22, %v1503_v38  ;;  %2573 = vrcp.f32 %v1393_v37  ;;  %vm120_vm1 = vcmp.ge.u32.totalorder %v88_v27, 858993459  ;;  %v95_v38 = vld [vmem:[#allocation8 + $0xa8] sm:$0xff] }
 0x256   :  { %v2562_v14 = vpop.eup %2561  ;;  %2418 = vmatprep.mubr.msk.bf16.mxu0 %vm266_vm0, %v1591_v11  ;;  %v1506_v49 = vmul.f32 1.25, %v2560_v19  ;;  %v1387_v5 = vpop.xlane.xlu0 %1386  ;;  %v1566_v35 = vsel %vm117_vm13, %v1534_v3, 0.0  ;;  %v1613_v19 = vpack.c.bf16 %v223_v26, %v222_v10  ;;  %v94_v3 = vld [vmem:[#allocation8 + $0xa0] sm:$0xff]  ;;  %vm127_vm4 = vcmp.ge.u32.totalorder %v95_v38, 858993459 }
 0x257   :  { %v1567_v15 = vsel %vm118_vm12, %v1535_v12, 0.0  ;;  %v1501_v24 = vmul.f32 1.25, %v2562_v14  ;;  %v1402_v42 = vpop.xlane.xlu1 %1401  ;;  %2425 = vmatpush3.bf16.msra.mxu1 %v1609_v46  ;;  %v3192_v12 = vpack.c.bf16 %v229_v59, %v228_v34  ;;  %vm126_vm5 = vcmp.ge.u32.totalorder %v94_v3, 858993459  ;;  %v99_v34 = vld [vmem:[#allocation8 + $0xc8] sm:$0xff]  ;;  %v230_v38 = vld [vmem:[#allocation7 + $0xe0] sm:$0xff] }
 0x258   :  { %2575 = vrcp.f32 %v1402_v42  ;;  %v1593_v22 = vpack.c.bf16 %v1568_v17, %v1567_v15  ;;  %2438 = vmatprep.subr.bf16.mxu1 %v3175_v6  ;;  %v1538_v48 = vmul.f32 %v3062_v53, %v1506_v49  ;;  %v233_v17 = vld [vmem:[#allocation7 + $0xf8] sm:$0xff]  ;;  %vm131_vm10 = vcmp.ge.u32.totalorder %v99_v34, 858993459 }
 0x259   :  { %v2564_v54 = vpop.eup %2563  ;;  %v1533_v51 = vmul.f32 %v3059_v50, %v1501_v24  ;;  %2577 = vrcp.f32 %v1387_v5 }
 0x25a   :  { %v2566_v23 = vpop.eup %2565  ;;  %2426 = vmatprep.mubr.msk.bf16.mxu1 %vm266_vm0, %v1593_v22  ;;  %v1508_v20 = vmul.f32 1.25, %v2564_v54  ;;  %v1399_v46 = vpop.xlane.xlu0 %1398  ;;  %v1570_v60 = vsel %vm121_vm15, %v1538_v48, 0.0  ;;  %v97_v48 = vld [vmem:[#allocation8 + $0xb8] sm:$0xff] }
 0x25b   :  { %v1565_v7 = vsel %vm116_vm14, %v1533_v51, 0.0  ;;  %v1505_v25 = vmul.f32 1.25, %v2566_v23  ;;  %v1408_v44 = vpop.xlane.xlu1 %1407  ;;  %v93_v51 = vld [vmem:[#allocation8 + $0x98] sm:$0xff]  ;;  %vm129_vm8 = vcmp.ge.u32.totalorder %v97_v48, 858993459 }
 0x25c   :  { %v1592_v50 = vpack.c.bf16 %v1566_v35, %v1565_v7  ;;  %2579 = vrcp.f32 %v1408_v44  ;;  %v1540_v29 = vmul.f32 %v3072_v57, %v1508_v20  ;;  %v232_v57 = vld [vmem:[#allocation7 + $0xf0] sm:$0xff]  ;;  %vm125_vm6 = vcmp.ge.u32.totalorder %v93_v51, 858993459 }
 0x25d   :  { %v2568_v56 = vpop.eup %2567  ;;  %v1537_v1 = vmul.f32 %v3069_v52, %v1505_v25  ;;  %2581 = vrcp.f32 %v1399_v46  ;;  %v96_v46 = vld [vmem:[#allocation8 + $0xb0] sm:$0xff] }
 0x25e   :  { %v2570_v53 = vpop.eup %2569  ;;  %v1512_v36 = vmul.f32 1.25, %v2568_v56  ;;  %2419 = vmatmul.mubr.msk.bf16.vlgmr.msra.gmra.mxu0 %vm266_vm0, %v1592_v50  ;;  %v1405_v52 = vpop.xlane.xlu0 %1404  ;;  %v226_v50 = vld [vmem:[#allocation7 + $0xc0] sm:$0xff]  ;;  %vm128_vm9 = vcmp.ge.u32.totalorder %v96_v46, 858993459 }
 0x25f   :  { %v1569_v33 = vsel %vm120_vm1, %v1537_v1, 0.0  ;;  %v1507_v4 = vmul.f32 1.25, %v2570_v53  ;;  %v1420_v37 = vpop.xlane.xlu1 %1419  ;;  %2431 = vmatpush3.bf16.msra.mxu0 %v3166_v47  ;;  %v1572_v47 = vsel %vm123_vm2, %v1540_v29, 0.0 }
 0x260   :  { %v1594_v11 = vpack.c.bf16 %v1570_v60, %v1569_v33  ;;  %2583 = vrcp.f32 %v1420_v37  ;;  %2432 = vmatprep.subr.bf16.mxu0 %v1611_v55  ;;  %v1544_v2 = vmul.f32 %v3082_v61, %v1512_v36  ;;  %v3201_v61 = vpack.c.bf16 %v233_v17, %v232_v57  ;;  %v98_v33 = vld [vmem:[#allocation8 + $0xc0] sm:$0xff]  ;;  %v103_v57 = vld [vmem:[#allocation8 + $0xe8] sm:$0xff] }
 0x261   :  { %v2572_v39 = vpop.eup %2571  ;;  %v1539_v14 = vmul.f32 %v3079_v63, %v1507_v4  ;;  %2585 = vrcp.f32 %v1405_v52  ;;  %v231_v4 = vld [vmem:[#allocation7 + $0xe8] sm:$0xff]  ;;  %vm130_vm11 = vcmp.ge.u32.totalorder %v98_v33, 858993459  ;;  %vm135_vm12 = vcmp.ge.u32.totalorder %v103_v57, 858993459 }
 0x262   :  { %v2574_v15 = vpop.eup %2573  ;;  %2427 = vmatmul.mubr.msk.bf16.vlgmr.msra.gmra.mxu1 %vm266_vm0, %v1594_v11  ;;  %v1510_v24 = vmul.f32 1.25, %v2572_v39  ;;  %v1417_v22 = vpop.xlane.xlu0 %1416  ;;  %v1576_v23 = vsel %vm127_vm4, %v1544_v2, 0.0 }
 0x263   :  { %v1571_v49 = vsel %vm122_vm3, %v1539_v14, 0.0  ;;  %v1511_v42 = vmul.f32 1.25, %v2574_v15  ;;  %v1414_v5 = vpop.xlane.xlu1 %1413  ;;  %2433 = vmatpush3.bf16.msra.mxu0 %v1611_v55  ;;  %2439 = vmatpush3.bf16.msra.mxu1 %v3175_v6  ;;  %v102_v15 = vld [vmem:[#allocation8 + $0xe0] sm:$0xff] }
 0x264   :  { %2587 = vrcp.f32 %v1414_v5  ;;  %v1595_v63 = vpack.c.bf16 %v1572_v47, %v1571_v49  ;;  %2440 = vmatprep.subr.bf16.mxu1 %v1613_v19  ;;  %2446 = vmatprep.subr.bf16.mxu0 %v3192_v12  ;;  %v1542_v6 = vmul.f32 %v3092_v40, %v1510_v24  ;;  %v227_v40 = vld [vmem:[#allocation7 + $0xc8] sm:$0xff]  ;;  %vm134_vm13 = vcmp.ge.u32.totalorder %v102_v15, 858993459 }
 0x265   :  { %v2576_v54 = vpop.eup %2575  ;;  %v1543_v27 = vmul.f32 %v3089_v18, %v1511_v42  ;;  %2589 = vrcp.f32 %v1417_v22 }
 0x266   :  { %v2578_v31 = vpop.eup %2577  ;;  %2434 = vmatprep.mubr.msk.bf16.mxu0 %vm266_vm0, %v1595_v63  ;;  %v1514_v7 = vmul.f32 1.25, %v2576_v54  ;;  %v1411_v25 = vpop.xlane.xlu0 %1410  ;;  %v1574_v56 = vsel %vm125_vm6, %v1542_v6, 0.0  ;;  %v100_v63 = vld [vmem:[#allocation8 + $0xd0] sm:$0xff] }
 0x267   :  { %v1575_v35 = vsel %vm126_vm5, %v1543_v27, 0.0  ;;  %v1509_v43 = vmul.f32 1.25, %v2578_v31  ;;  %v1426_v20 = vpop.xlane.xlu1 %1425  ;;  %2441 = vmatpush3.bf16.msra.mxu1 %v1613_v19  ;;  %vm132_vm15 = vcmp.ge.u32.totalorder %v100_v63, 858993459 }
 0x268   :  { %2591 = vrcp.f32 %v1426_v20  ;;  %v1597_v18 = vpack.c.bf16 %v1576_v23, %v1575_v35  ;;  %2454 = vmatprep.subr.bf16.mxu1 %v3201_v61  ;;  %v1546_v1 = vmul.f32 %v3102_v9, %v1514_v7  ;;  %v104_v23 = vld [vmem:[#allocation8 + $0xf0] sm:$0xff] }
 0x269   :  { %v2580_v32 = vpop.eup %2579  ;;  %v1541_v44 = vmul.f32 %v3099_v41, %v1509_v43  ;;  %2593 = vrcp.f32 %v1411_v25  ;;  %v1615_v41 = vpack.c.bf16 %v227_v40, %v226_v50  ;;  %vm136_vm2 = vcmp.ge.u32.totalorder %v104_v23, 858993459 }
 0x26a   :  { %v2582_v55 = vpop.eup %2581  ;;  %v1516_v10 = vmul.f32 1.25, %v2580_v32  ;;  %2442 = vmatprep.mubr.msk.bf16.mxu1 %vm266_vm0, %v1597_v18  ;;  %v1423_v53 = vpop.xlane.xlu0 %1422  ;;  %v1578_v9 = vsel %vm129_vm8, %v1546_v1, 0.0 }
 0x26b   :  { %v1573_v26 = vsel %vm124_vm7, %v1541_v44, 0.0  ;;  %v1513_v59 = vmul.f32 1.25, %v2582_v55  ;;  %2595 = vrcp.f32 %v1423_v53 }
 0x26c   :  { %v1596_v36 = vpack.c.bf16 %v1574_v56, %v1573_v26  ;;  %v1548_v52 = vmul.f32 %v3111_v62, %v1516_v10 }
 0x26d   :  { %v2584_v60 = vpop.eup %2583  ;;  %v1545_v29 = vmul.f32 %v3109_v13, %v1513_v59  ;;  %v1617_v13 = vpack.c.bf16 %v231_v4, %v230_v38 }
 0x26e   :  { %v2586_v37 = vpop.eup %2585  ;;  %2435 = vmatmul.mubr.msk.bf16.vlgmr.msra.gmra.mxu0 %vm266_vm0, %v1596_v36  ;;  %v1520_v19 = vmul.f32 1.25, %v2584_v60  ;;  %v1580_v62 = vsel %vm131_vm10, %v1548_v52, 0.0 }
 0x26f   :  { %v1577_v11 = vsel %vm128_vm9, %v1545_v29, 0.0  ;;  %v1515_v39 = vmul.f32 1.25, %v2586_v37  ;;  %2447 = vmatpush3.bf16.msra.mxu0 %v3192_v12 }
 0x270   :  { %v1598_v14 = vpack.c.bf16 %v1578_v9, %v1577_v11  ;;  %2448 = vmatprep.subr.bf16.mxu0 %v1615_v41  ;;  %v1552_v47 = vmul.f32 %v3119_v16, %v1520_v19 }
 0x271   :  { %v2588_v3 = vpop.eup %2587  ;;  %v1547_v17 = vmul.f32 %v3117_v58, %v1515_v39  ;;  %v101_v58 = vld [vmem:[#allocation8 + $0xd8] sm:$0xff] }
 0x272   :  { %v2590_v2 = vpop.eup %2589  ;;  %2443 = vmatmul.mubr.msk.bf16.vlgmr.msra.gmra.mxu1 %vm266_vm0, %v1598_v14  ;;  %v1518_v24 = vmul.f32 1.25, %v2588_v3  ;;  %v1584_v16 = vsel %vm135_vm12, %v1552_v47, 0.0  ;;  %vm133_vm14 = vcmp.ge.u32.totalorder %v101_v58, 858993459 }
 0x273   :  { %v1579_v49 = vsel %vm130_vm11, %v1547_v17, 0.0  ;;  %v1519_v42 = vmul.f32 1.25, %v2590_v2  ;;  %2455 = vmatpush3.bf16.msra.mxu1 %v3201_v61  ;;  %2449 = vmatpush3.bf16.msra.mxu0 %v1615_v41  ;;  %v105_v61 = vld [vmem:[#allocation8 + $0xf8] sm:$0xff] }
 0x274   :  { %v1599_v12 = vpack.c.bf16 %v1580_v62, %v1579_v49  ;;  %2456 = vmatprep.subr.bf16.mxu1 %v1617_v13  ;;  %v1550_v27 = vmul.f32 %v3129_v0, %v1518_v24  ;;  %vm137_vm1 = vcmp.ge.u32.totalorder %v105_v61, 858993459 }
 0x275   :  { %v2592_v5 = vpop.eup %2591  ;;  %v1551_v22 = vmul.f32 %v3127_v8, %v1519_v42 }
 0x276   :  { %v2594_v54 = vpop.eup %2593  ;;  %v1522_v51 = vmul.f32 1.25, %v2592_v5  ;;  %2450 = vmatprep.mubr.msk.bf16.mxu0 %vm266_vm0, %v1599_v12  ;;  %v1582_v43 = vsel %vm133_vm14, %v1550_v27, 0.0 }
 0x277   :  { %v1583_v30 = vsel %vm134_vm13, %v1551_v22, 0.0  ;;  %v1517_v31 = vmul.f32 1.25, %v2594_v54  ;;  %2457 = vmatpush3.bf16.msra.mxu1 %v1617_v13 }
 0x278   :  { %v1601_v6 = vpack.c.bf16 %v1584_v16, %v1583_v30  ;;  %v2596_v35 = vpop.eup %2595  ;;  %v1554_v8 = vmul.f32 %v3140_v45, %v1522_v51 }
 0x279   :  { %v1549_v48 = vmul.f32 %v3138_v21, %v1517_v31  ;;  %v1521_v7 = vmul.f32 1.25, %v2596_v35 }
 0x27a   :  { %2458 = vmatprep.mubr.msk.bf16.mxu1 %vm266_vm0, %v1601_v6  ;;  %v1586_v18 = vsel %vm137_vm1, %v1554_v8, 0.0 }
 0x27b   :  { %v1581_v20 = vsel %vm132_vm15, %v1549_v48, 0.0  ;;  %v1553_v25 = vmul.f32 %v3147_v28, %v1521_v7 }
 0x27c   :  { %v1600_v0 = vpack.c.bf16 %v1582_v43, %v1581_v20 }
 0x27d   :  { %v1585_v32 = vsel %vm136_vm2, %v1553_v25, 0.0 }
 0x27e   :  { %2451 = vmatmul.mubr.msk.bf16.vlgmr.msra.gmra.mxu0 %vm266_vm0, %v1600_v0  ;;  %v1602_v44 = vpack.c.bf16 %v1586_v18, %v1585_v32 }
 0x280   :  { %2459 = vmatmul.mubr.msk.bf16.vlgmr.msra.gmra.mxu1 %vm266_vm0, %v1602_v44 }
 0x30e   :  { %v2404_v21 = vpop.f32.mrf.mxu0 }
 0x30f   :  { %2061 = vst.msk [vmem:[#allocation10 + $0x10] sm:$0xff] %vm266_vm0, %v2404_v21 }
 0x310   :  { %v1659_v45 = vpop.f32.mrf.mxu0 }
 0x311   :  { %2059 = vst.msk [vmem:[#allocation10] sm:$0xff] %vm266_vm0, %v1659_v45 }
 0x312   :  { %v2405_v46 = vpop.f32.mrf.mxu0  ;;  %v2412_v50 = vpop.f32.mrf.mxu1 }
 0x313   :  { %2062 = vst.msk [vmem:[#allocation10 + $0x18] sm:$0xff] %vm266_vm0, %v2405_v46  ;;  %2065 = vst.msk [vmem:[#allocation10 + $0x30] sm:$0xff] %vm266_vm0, %v2412_v50 }
 0x314   :  { %v1662_v28 = vpop.f32.mrf.mxu0  ;;  %v1714_v40 = vpop.f32.mrf.mxu1 }
 0x315   :  { %2060 = vst.msk [vmem:[#allocation10 + $0x8] sm:$0xff] %vm266_vm0, %v1662_v28  ;;  %2063 = vst.msk [vmem:[#allocation10 + $0x20] sm:$0xff] %vm266_vm0, %v1714_v40 }
 0x316   :  { %v2413_v55 = vpop.f32.mrf.mxu1 }
 0x317   :  { %2066 = vst.msk [vmem:[#allocation10 + $0x38] sm:$0xff] %vm266_vm0, %v2413_v55 }
 0x318   :  { %v1717_v10 = vpop.f32.mrf.mxu1 }
 0x319   :  { %2064 = vst.msk [vmem:[#allocation10 + $0x28] sm:$0xff] %vm266_vm0, %v1717_v10 }
 0x31e   :  { %v2420_v56 = vpop.f32.mrf.mxu0 }
 0x31f   :  { %2069 = vst.msk [vmem:[#allocation10 + $0x50] sm:$0xff] %vm266_vm0, %v2420_v56 }
 0x320   :  { %v1769_v1 = vpop.f32.mrf.mxu0 }
 0x321   :  { %2067 = vst.msk [vmem:[#allocation10 + $0x40] sm:$0xff] %vm266_vm0, %v1769_v1 }
 0x322   :  { %v2421_v26 = vpop.f32.mrf.mxu0  ;;  %v2428_v34 = vpop.f32.mrf.mxu1 }
 0x323   :  { %2070 = vst.msk [vmem:[#allocation10 + $0x58] sm:$0xff] %vm266_vm0, %v2421_v26  ;;  %2073 = vst.msk [vmem:[#allocation10 + $0x70] sm:$0xff] %vm266_vm0, %v2428_v34 }
 0x324   :  { %v1772_v59 = vpop.f32.mrf.mxu0  ;;  %v1824_v53 = vpop.f32.mrf.mxu1 }
 0x325   :  { %2068 = vst.msk [vmem:[#allocation10 + $0x48] sm:$0xff] %vm266_vm0, %v1772_v59  ;;  %2071 = vst.msk [vmem:[#allocation10 + $0x60] sm:$0xff] %vm266_vm0, %v1824_v53 }
 0x326   :  { %v2429_v36 = vpop.f32.mrf.mxu1 }
 0x327   :  { %2074 = vst.msk [vmem:[#allocation10 + $0x78] sm:$0xff] %vm266_vm0, %v2429_v36 }
 0x328   :  { %v1827_v41 = vpop.f32.mrf.mxu1 }
 0x329   :  { %2072 = vst.msk [vmem:[#allocation10 + $0x68] sm:$0xff] %vm266_vm0, %v1827_v41 }
 0x32e   :  { %v2436_v60 = vpop.f32.mrf.mxu0 }
 0x32f   :  { %2077 = vst.msk [vmem:[#allocation10 + $0x90] sm:$0xff] %vm266_vm0, %v2436_v60 }
 0x330   :  { %v1879_v29 = vpop.f32.mrf.mxu0 }
 0x331   :  { %2075 = vst.msk [vmem:[#allocation10 + $0x80] sm:$0xff] %vm266_vm0, %v1879_v29 }
 0x332   :  { %v2437_v33 = vpop.f32.mrf.mxu0  ;;  %v2444_v38 = vpop.f32.mrf.mxu1 }
 0x333   :  { %2078 = vst.msk [vmem:[#allocation10 + $0x98] sm:$0xff] %vm266_vm0, %v2437_v33  ;;  %2081 = vst.msk [vmem:[#allocation10 + $0xb0] sm:$0xff] %vm266_vm0, %v2444_v38 }
 0x334   :  { %v1882_v4 = vpop.f32.mrf.mxu0  ;;  %v1934_v37 = vpop.f32.mrf.mxu1 }
 0x335   :  { %2076 = vst.msk [vmem:[#allocation10 + $0x88] sm:$0xff] %vm266_vm0, %v1882_v4  ;;  %2079 = vst.msk [vmem:[#allocation10 + $0xa0] sm:$0xff] %vm266_vm0, %v1934_v37 }
 0x336   :  { %v2445_v52 = vpop.f32.mrf.mxu1 }
 0x337   :  { %2082 = vst.msk [vmem:[#allocation10 + $0xb8] sm:$0xff] %vm266_vm0, %v2445_v52 }
 0x338   :  { %v1937_v9 = vpop.f32.mrf.mxu1 }
 0x339   :  { %2080 = vst.msk [vmem:[#allocation10 + $0xa8] sm:$0xff] %vm266_vm0, %v1937_v9 }
 0x33e   :  { %v2452_v11 = vpop.f32.mrf.mxu0 }
 0x33f   :  { %2085 = vst.msk [vmem:[#allocation10 + $0xd0] sm:$0xff] %vm266_vm0, %v2452_v11 }
 0x340   :  { %v1989_v19 = vpop.f32.mrf.mxu0  ;;  %v2460_v39 = vpop.f32.mrf.mxu1 }
 0x341   :  { %2083 = vst.msk [vmem:[#allocation10 + $0xc0] sm:$0xff] %vm266_vm0, %v1989_v19  ;;  %2089 = vst.msk [vmem:[#allocation10 + $0xf0] sm:$0xff] %vm266_vm0, %v2460_v39 }
 0x342   :  { %v2453_v14 = vpop.f32.mrf.mxu0  ;;  %v2044_v13 = vpop.f32.mrf.mxu1 }
 0x343   :  { %2086 = vst.msk [vmem:[#allocation10 + $0xd8] sm:$0xff] %vm266_vm0, %v2453_v14  ;;  %2087 = vst.msk [vmem:[#allocation10 + $0xe0] sm:$0xff] %vm266_vm0, %v2044_v13 }
 0x344   :  { %v1992_v3 = vpop.f32.mrf.mxu0  ;;  %v2461_v57 = vpop.f32.mrf.mxu1 }
 0x345   :  { %2084 = vst.msk [vmem:[#allocation10 + $0xc8] sm:$0xff] %vm266_vm0, %v1992_v3  ;;  %2090 = vst.msk [vmem:[#allocation10 + $0xf8] sm:$0xff] %vm266_vm0, %v2461_v57 }
 0x346   :  { %v2047_v17 = vpop.f32.mrf.mxu1 }
 0x347   :  { %2088 = vst.msk [vmem:[#allocation10 + $0xe8] sm:$0xff] %vm266_vm0, %v2047_v17 }
 0x348   :  { %2688 = shalt.err (!%p2685_p10)
}
 0x349   :  { %2102 = dma.vmem_to_hbm [thread:$0]  %s2097_s3, 4096, %s3273_s4, [#allocation4], %s2707_s20, %s2707_s20, %s2708_s21  }
 0x34a   :  { %2703 = dma.done.wait [#allocation4], 4096  }
 0x34b   :  { %2704 = vsyncadd [#allocation4], 4294963200 }
 0x34c   :  { %2106 = vsyncpa [#allocation3], 1 }
 0x34d   :  { %2107 = vsyncpa [#allocation6], 1 }
 0x34e   :  { %2108 = vsyncpa [#allocation9], 1 }
 0x34f   :  { %2109 = vsyncpa [#allocation4], 1 }

</bundles_post_ra>
